<compile_context>
chip_gen: v7x
topology: tpu7x:2x2x1
jax: 0.10.0
libtpu: 0.0.40
codegen_flags: <defaults>
</compile_context>

<pallas_src>
import functools

import jax
import jax.numpy as jnp
from jax.experimental import pallas as pl
from jax.experimental.pallas import tpu as pltpu

N_PAD = 128  # lane-dense padded width of the fc2 output slab


def _conv_out(size, k, s):
    return (size - k) // s + 1


# ----------------------------------------------------------------------------
# Fused forward kernel: conv1 -> conv2 -> conv3 -> fc1 -> fc2, five MXU dots.
#
# Row-layout invariants (all statically derived in prepare_params / asserted there):
#   * conv1 output a1 has rows ordered (rh, rw, gh, gw, b):  slab (rh, rw) of size
#     n1 = gch*gcw*batch, within a slab row = (gh*gcw + gw)*batch + b ("cell" grid,
#     gch = oh2+1, gcw = ow2+1, conv1 position = (2*gh+rh, 2*gw+rw)).
#   * conv2/conv3 outputs are indexed on that same cell grid (row = cellpos*batch + b),
#     so every conv tap is a contiguous row slice at a static offset; garbage rows
#     (cell positions that are not valid conv outputs) are never read by any valid
#     downstream position -- max slice offsets land exactly on the last row (asserted).
# ----------------------------------------------------------------------------
def _dqn_kernel(x1_ref, w1_ref, b1_ref, w2_ref, b2_ref, w3_ref, b3_ref,
                wf1_ref, fb1_ref, wf2_ref, fb2_ref, o_ref,
                a1_ref, x2_ref, a2_ref, x3_ref, a3_ref, xf_ref,
                *, batch, gch, gcw, oh2, ow2, oh3, ow3):
    f32, bf16 = jnp.float32, jnp.bfloat16
    n1 = gch * gcw * batch                       # rows per (rh, rw) slab of conv1 output
    n2 = ((oh2 - 1) * gcw + ow2) * batch         # conv2 rows computed (cell-grid indexed)
    n3 = ((oh3 - 1) * gcw + ow3) * batch         # conv3 rows computed
    c1 = w1_ref.shape[1]                         # 32
    c2 = w2_ref.shape[1]                         # 64
    c3 = w3_ref.shape[1]                         # 64

    # ---- conv1 (8x8 / s4): ONE dot over the wrapper-built im2col, K = 64*Cin. ----
    a1 = jnp.dot(x1_ref[...], w1_ref[...], preferred_element_type=f32)
    a1_ref[...] = jnp.maximum(a1 + b1_ref[...], 0.0).astype(bf16)     # (4*n1, c1)

    # ---- conv2 (4x4 / s2): K-folded im2col (16 contiguous slices -> K = 16*c1). ----
    # Tap (kh, kw) = (2*di + rh, 2*dj + rw); slice offset = (rh*2+rw)*n1 + (di*gcw+dj)*batch.
    t = 0
    for rh in range(2):
        for rw in range(2):
            base = (rh * 2 + rw) * n1
            for di in range(2):
                for dj in range(2):
                    off = base + (di * gcw + dj) * batch
                    x2_ref[:, t * c1:(t + 1) * c1] = a1_ref[off:off + n2, :]
                    t += 1
    a2 = jnp.dot(x2_ref[...], w2_ref[...], preferred_element_type=f32)
    a2_ref[...] = jnp.maximum(a2 + b2_ref[...], 0.0).astype(bf16)     # (n2, c2)

    # ---- conv3 (3x3 / s1): 9 contiguous slices -> K = 9*c2. ----
    for i in range(3):
        for j in range(3):
            off = (i * gcw + j) * batch
            t = i * 3 + j
            x3_ref[:, t * c2:(t + 1) * c2] = a2_ref[off:off + n3, :]
    a3 = jnp.dot(x3_ref[...], w3_ref[...], preferred_element_type=f32)
    a3_ref[...] = jnp.maximum(a3 + b3_ref[...], 0.0).astype(bf16)     # (n3, c3)

    # ---- fc1: gather the oh3*ow3 valid conv3 rows (contiguous batch-sized slices),
    #      K = oh3*ow3*c3, single dot. ----
    for ph in range(oh3):
        for pw in range(ow3):
            off = (ph * gcw + pw) * batch
            t = ph * ow3 + pw
            xf_ref[:, t * c3:(t + 1) * c3] = a3_ref[off:off + batch, :]
    h = jnp.dot(xf_ref[...], wf1_ref[...], preferred_element_type=f32)
    h = jnp.maximum(h + fb1_ref[...], 0.0).astype(bf16)               # (batch, 512)

    # ---- fc2 (no ReLU): lane-dense padded 128-wide slab, unmasked full store. ----
    o_ref[...] = jnp.dot(h, wf2_ref[...], preferred_element_type=f32) + fb2_ref[...]


# ----------------------------------------------------------------------------
# Wrapper-side conv1 im2col (pure layout work on the small input, once per forward).
# Rows ordered (rh, rw, gh, gw, b); features ordered (bi, bj, r4h, r4w, c) where the
# conv1 kernel position (kh, kw) = (4*bi + r4h, 4*bj + r4w).  Only the 2*gch x 2*gcw
# conv1 output positions consumed downstream are emitted (no dead rows).
# ----------------------------------------------------------------------------
def _conv1_im2col(x, gch, gcw):
    B, C, H, W = x.shape
    hb, wb = H // 4, W // 4
    x = x[:, :, :hb * 4, :wb * 4]
    xt = jnp.transpose(x, (0, 2, 3, 1))                                   # (B, H, W, C)
    g = xt.reshape(B, hb, 4, wb, 4, C)
    g = jnp.transpose(g, (0, 1, 3, 2, 4, 5)).reshape(B, hb, wb, 16 * C)   # s2d(4)
    taps = [g[:, bi:bi + 2 * gch, bj:bj + 2 * gcw, :]
            for bi in range(2) for bj in range(2)]
    p = jnp.concatenate(taps, axis=-1)                                    # (B, 2gch, 2gcw, 64C)
    p = p.reshape(B, gch, 2, gcw, 2, 64 * C)
    p = jnp.transpose(p, (2, 4, 1, 3, 0, 5))                              # (rh, rw, gh, gw, B, 64C)
    return p.reshape(4 * gch * gcw * B, 64 * C).astype(jnp.bfloat16)


# ----------------------------------------------------------------------------
# One-time parameter re-layout (PyTorch format -> kernel format).  Batch-independent.
# ----------------------------------------------------------------------------
def prepare_params(params, input_dims, n_actions):
    (w1, b1), (w2, b2), (w3, b3), (fw1, fb1), (fw2, fb2) = params
    C, H, W = input_dims
    assert n_actions <= N_PAD
    oh1, ow1 = _conv_out(H, 8, 4), _conv_out(W, 8, 4)
    oh2, ow2 = _conv_out(oh1, 4, 2), _conv_out(ow1, 4, 2)
    oh3, ow3 = _conv_out(oh2, 3, 1), _conv_out(ow2, 3, 1)
    assert oh3 >= 1 and ow3 >= 1
    gch, gcw = oh2 + 1, ow2 + 1                    # conv1 cell grid consumed downstream
    # Geometry invariants the kernel's static slice offsets rely on:
    assert 2 * gch <= oh1 and 2 * gcw <= ow1       # cell grid fits inside conv1's output
    assert 2 * gch + 1 <= H // 4 and 2 * gcw + 1 <= W // 4
    # max conv2 tap read lands exactly on the last conv1 row of its (rh, rw) slab:
    assert oh2 * gcw + ow2 + 1 <= gch * gcw
    # max conv3 tap read stays inside the computed conv2 rows:
    assert (oh3 + 1) * gcw + ow3 + 2 <= (oh2 - 1) * gcw + ow2

    bf16, f32 = jnp.bfloat16, jnp.float32
    cout1, cout2, cout3 = w1.shape[0], w2.shape[0], w3.shape[0]
    cin = w1.shape[1]

    # conv1: OIHW (32, C, 8, 8) -> (64*C, 32); K ordered (bi, bj, r4h, r4w, c), kh=4*bi+r4h.
    w1k = jnp.transpose(w1.reshape(cout1, cin, 2, 4, 2, 4), (2, 4, 3, 5, 1, 0))
    w1k = w1k.reshape(64 * cin, cout1).astype(bf16)

    # conv2: OIHW (64, 32, 4, 4) -> (16*32, 64); K ordered (rh, rw, di, dj, cin), kh=2*di+rh.
    w2k = jnp.transpose(w2.reshape(cout2, cout1, 2, 2, 2, 2), (3, 5, 2, 4, 1, 0))
    w2k = w2k.reshape(16 * cout1, cout2).astype(bf16)

    # conv3: OIHW (64, 64, 3, 3) -> (9*64, 64); K ordered (kh, kw, cin).
    w3k = jnp.transpose(w3, (2, 3, 1, 0)).reshape(9 * cout2, cout3).astype(bf16)

    # fc1: (512, C3*oh3*ow3) with NCHW-flatten columns -> (oh3*ow3*C3, 512); K ordered (ph3, pw3, c).
    wf1k = jnp.transpose(fw1.reshape(fw1.shape[0], cout3, oh3, ow3), (2, 3, 1, 0))
    wf1k = wf1k.reshape(oh3 * ow3 * cout3, fw1.shape[0]).astype(bf16)

    # fc2: (n_actions, 512) -> padded lane-dense (512, 128) slab.
    wf2k = jnp.zeros((fw2.shape[1], N_PAD), f32).at[:, :n_actions].set(fw2.T).astype(bf16)
    fb2k = jnp.zeros((1, N_PAD), f32).at[0, :n_actions].set(fb2)

    kparams = dict(
        w1=w1k, b1=b1.reshape(1, -1).astype(f32),
        w2=w2k, b2=b2.reshape(1, -1).astype(f32),
        w3=w3k, b3=b3.reshape(1, -1).astype(f32),
        wf1=wf1k, fb1=fb1.reshape(1, -1).astype(f32),
        wf2=wf2k, fb2=fb2k)
    dims = (gch, gcw, oh2, ow2, oh3, ow3)
    return kparams, dims


# ----------------------------------------------------------------------------
# Forward pass: one pallas_call, everything resident in VMEM.
# ----------------------------------------------------------------------------
@functools.partial(jax.jit, static_argnames=("n_actions", "dims"))
def dqn_forward(x, kparams, *, n_actions, dims):
    gch, gcw, oh2, ow2, oh3, ow3 = dims
    batch = x.shape[0]
    # conv1 im2col: small layout-only transform of the input, fused by XLA into this jit.
    x1 = _conv1_im2col(x, gch, gcw)

    n1 = gch * gcw * batch
    n2 = ((oh2 - 1) * gcw + ow2) * batch
    n3 = ((oh3 - 1) * gcw + ow3) * batch
    c1 = kparams["w1"].shape[1]
    c2 = kparams["w2"].shape[1]
    c3 = kparams["w3"].shape[1]
    npos = oh3 * ow3

    kernel = functools.partial(_dqn_kernel, batch=batch, gch=gch, gcw=gcw,
                               oh2=oh2, ow2=ow2, oh3=oh3, ow3=ow3)

    # NOTE: single grid point (batch=2 here, total VMEM < 2 MiB).  For large batches,
    # scale by adding grid=(num_batch_tiles,) with dimension_semantics=("parallel",) and
    # batch-tiled BlockSpecs (weights full) so the two v7x TensorCores split the batch.
    out_pad = pl.pallas_call(
        kernel,
        out_shape=jax.ShapeDtypeStruct((batch, N_PAD), jnp.float32),
        in_specs=[pl.BlockSpec(memory_space=pltpu.MemorySpace.VMEM)] * 11,
        out_specs=pl.BlockSpec(memory_space=pltpu.MemorySpace.VMEM),
        scratch_shapes=[
            pltpu.VMEM((4 * n1, c1), jnp.bfloat16),        # a1  (conv1 activations)
            pltpu.VMEM((n2, 16 * c1), jnp.bfloat16),       # x2  (conv2 im2col, K=512)
            pltpu.VMEM((n2, c2), jnp.bfloat16),            # a2
            pltpu.VMEM((n3, 9 * c2), jnp.bfloat16),        # x3  (conv3 im2col, K=576)
            pltpu.VMEM((n3, c3), jnp.bfloat16),            # a3
            pltpu.VMEM((batch, npos * c3), jnp.bfloat16),  # x_fc1 (K = npos*64)
        ],
        compiler_params=pltpu.CompilerParams(vmem_limit_bytes=32 * 1024 * 1024),
    )(x1, kparams["w1"], kparams["b1"], kparams["w2"], kparams["b2"],
      kparams["w3"], kparams["b3"], kparams["wf1"], kparams["fb1"],
      kparams["wf2"], kparams["fb2"])
    return out_pad[:, :n_actions]


# ----------------------------------------------------------------------------
# Pure-JAX reference (PyTorch-layout params) for the correctness check.
# ----------------------------------------------------------------------------
def dqn_forward_ref(x, params):
    (w1, b1), (w2, b2), (w3, b3), (fw1, fb1), (fw2, fb2) = params

    def conv(x, w, b, stride):
        y = jax.lax.conv_general_dilated(
            x, w, window_strides=(stride, stride), padding='VALID',
            dimension_numbers=('NCHW', 'OIHW', 'NCHW'))
        return jax.nn.relu(y + b[None, :, None, None])

    h = conv(x, w1, b1, 4)
    h = conv(h, w2, b2, 2)
    h = conv(h, w3, b3, 1)
    flat = h.reshape(h.shape[0], -1)
    h = jax.nn.relu(flat @ fw1.T + fb1)
    return h @ fw2.T + fb2


# ----------------------------------------------------------------------------
# Deterministic parameter init (shapes from DeepQNetwork.__init__, PyTorch layout).
# ----------------------------------------------------------------------------
def init_params(key, in_channels, n_actions, fc_input_dims):
    def uinit(k, shape, fan_in):
        bound = 1.0 / jnp.sqrt(fan_in)
        return jax.random.uniform(k, shape, jnp.float32, -bound, bound)

    ks = jax.random.split(key, 10)
    w1 = uinit(ks[0], (32, in_channels, 8, 8), in_channels * 64)
    b1 = uinit(ks[1], (32,), in_channels * 64)
    w2 = uinit(ks[2], (64, 32, 4, 4), 32 * 16)
    b2 = uinit(ks[3], (64,), 32 * 16)
    w3 = uinit(ks[4], (64, 64, 3, 3), 64 * 9)
    b3 = uinit(ks[5], (64,), 64 * 9)
    fw1 = uinit(ks[6], (512, fc_input_dims), fc_input_dims)
    fb1 = uinit(ks[7], (512,), fc_input_dims)
    fw2 = uinit(ks[8], (n_actions, 512), 512)
    fb2 = uinit(ks[9], (n_actions,), 512)
    return ((w1, b1), (w2, b2), (w3, b3), (fw1, fb1), (fw2, fb2))


if __name__ == "__main__":
    # Small Atari-like config: batch=2, input_dims=(4, 48, 48), n_actions=6.
    # conv sizes: 48 -> 11 -> 4 -> 2  =>  fc_input_dims = 64*2*2 = 256
    B, C, H, W = 2, 4, 48, 48
    n_actions = 6
    oh1 = _conv_out(H, 8, 4)
    oh2 = _conv_out(oh1, 4, 2)
    oh3 = _conv_out(oh2, 3, 1)
    fc_input_dims = 64 * oh3 * oh3

    key = jax.random.PRNGKey(0)
    k_x, k_p = jax.random.split(key)
    x = jax.random.normal(k_x, (B, C, H, W), jnp.float32)
    params = init_params(k_p, C, n_actions, fc_input_dims)

    kparams, dims = prepare_params(params, (C, H, W), n_actions)

    actions = dqn_forward(x, kparams, n_actions=n_actions, dims=dims)
    actions = jax.block_until_ready(actions)

    ref = dqn_forward_ref(x, params)
    assert actions.shape == (B, n_actions), actions.shape
    assert jnp.all(jnp.isfinite(actions))
    assert jnp.allclose(actions, ref, rtol=5e-2, atol=2e-2), (
        "mismatch vs JAX reference, max |diff| = "
        f"{float(jnp.max(jnp.abs(actions - ref)))}")

    print("KERNEL_OK")
</pallas_src>

<mosaic_0001>
module attributes {stable_mosaic.version = 11 : i64} {
  func.func @_dqn_kernel(%arg0: memref<200x256xbf16, #tpu.memory_space<vmem>>, %arg1: memref<256x32xbf16, #tpu.memory_space<vmem>>, %arg2: memref<1x32xf32, #tpu.memory_space<vmem>>, %arg3: memref<512x64xbf16, #tpu.memory_space<vmem>>, %arg4: memref<1x64xf32, #tpu.memory_space<vmem>>, %arg5: memref<576x64xbf16, #tpu.memory_space<vmem>>, %arg6: memref<1x64xf32, #tpu.memory_space<vmem>>, %arg7: memref<256x512xbf16, #tpu.memory_space<vmem>>, %arg8: memref<1x512xf32, #tpu.memory_space<vmem>>, %arg9: memref<512x128xbf16, #tpu.memory_space<vmem>>, %arg10: memref<1x128xf32, #tpu.memory_space<vmem>>, %arg11: memref<2x128xf32, #tpu.memory_space<vmem>>, %arg12: memref<200x32xbf16, #tpu.memory_space<vmem>>, %arg13: memref<38x512xbf16, #tpu.memory_space<vmem>>, %arg14: memref<38x64xbf16, #tpu.memory_space<vmem>>, %arg15: memref<14x576xbf16, #tpu.memory_space<vmem>>, %arg16: memref<14x64xbf16, #tpu.memory_space<vmem>>, %arg17: memref<2x256xbf16, #tpu.memory_space<vmem>>) attributes {dimension_semantics = [], scalar_prefetch = 0 : i64, scratch_operands = 6 : i64, tpu.core_type = #tpu.core_type<tc>} {
    %c0 = arith.constant 0 : index
    %c0_0 = arith.constant 0 : index
    %0 = vector.load %arg0[%c0, %c0_0] : memref<200x256xbf16, #tpu.memory_space<vmem>>, vector<200x256xbf16>
    %c0_1 = arith.constant 0 : index
    %c0_2 = arith.constant 0 : index
    %1 = vector.load %arg1[%c0_1, %c0_2] : memref<256x32xbf16, #tpu.memory_space<vmem>>, vector<256x32xbf16>
    %cst = arith.constant dense<0.000000e+00> : vector<200x32xf32>
    %2 = tpu.matmul %0, %1, %cst {dimension_numbers = #tpu.dot_dimension_numbers<[1], [0], [0], [1], [0, 0, 1, 1], [], []>} : vector<200x256xbf16>, vector<256x32xbf16>, vector<200x32xf32> -> vector<200x32xf32>
    %c0_3 = arith.constant 0 : index
    %c0_4 = arith.constant 0 : index
    %3 = vector.load %arg2[%c0_3, %c0_4] : memref<1x32xf32, #tpu.memory_space<vmem>>, vector<1x32xf32>
    %4 = vector.broadcast %3 : vector<1x32xf32> to vector<200x32xf32>
    %5 = arith.addf %2, %4 : vector<200x32xf32>
    %cst_5 = arith.constant 0.000000e+00 : f32
    %6 = vector.broadcast %cst_5 : f32 to vector<200x32xf32>
    %7 = arith.maximumf %5, %6 : vector<200x32xf32>
    %8 = arith.truncf %7 : vector<200x32xf32> to vector<200x32xbf16>
    %c0_6 = arith.constant 0 : index
    %c0_7 = arith.constant 0 : index
    %9 = vector.load %arg12[%c0_6, %c0_7] : memref<200x32xbf16, #tpu.memory_space<vmem>>, vector<200x32xbf16>
    tpu.vector_store %arg12[%c0_6, %c0_7], %8 {strides = array<i32>} : memref<200x32xbf16, #tpu.memory_space<vmem>>, vector<200x32xbf16>,
    %c0_8 = arith.constant 0 : index
    %c0_9 = arith.constant 0 : index
    %10 = vector.load %arg12[%c0_8, %c0_9] : memref<200x32xbf16, #tpu.memory_space<vmem>>, vector<38x32xbf16>
    %c0_10 = arith.constant 0 : index
    %c0_11 = arith.constant 0 : index
    %11 = vector.load %arg13[%c0_10, %c0_11] : memref<38x512xbf16, #tpu.memory_space<vmem>>, vector<38x32xbf16>
    tpu.vector_store %arg13[%c0_10, %c0_11], %10 {strides = array<i32>} : memref<38x512xbf16, #tpu.memory_space<vmem>>, vector<38x32xbf16>,
    %c2 = arith.constant 2 : index
    %c0_12 = arith.constant 0 : index
    %12 = vector.load %arg12[%c2, %c0_12] : memref<200x32xbf16, #tpu.memory_space<vmem>>, vector<38x32xbf16>
    %c0_13 = arith.constant 0 : index
    %c32 = arith.constant 32 : index
    %13 = vector.load %arg13[%c0_13, %c32] : memref<38x512xbf16, #tpu.memory_space<vmem>>, vector<38x32xbf16>
    tpu.vector_store %arg13[%c0_13, %c32], %12 {strides = array<i32>} : memref<38x512xbf16, #tpu.memory_space<vmem>>, vector<38x32xbf16>,
    %c10 = arith.constant 10 : index
    %c0_14 = arith.constant 0 : index
    %14 = vector.load %arg12[%c10, %c0_14] : memref<200x32xbf16, #tpu.memory_space<vmem>>, vector<38x32xbf16>
    %c0_15 = arith.constant 0 : index
    %c64 = arith.constant 64 : index
    %15 = vector.load %arg13[%c0_15, %c64] : memref<38x512xbf16, #tpu.memory_space<vmem>>, vector<38x32xbf16>
    tpu.vector_store %arg13[%c0_15, %c64], %14 {strides = array<i32>} : memref<38x512xbf16, #tpu.memory_space<vmem>>, vector<38x32xbf16>,
    %c12 = arith.constant 12 : index
    %c0_16 = arith.constant 0 : index
    %16 = vector.load %arg12[%c12, %c0_16] : memref<200x32xbf16, #tpu.memory_space<vmem>>, vector<38x32xbf16>
    %c0_17 = arith.constant 0 : index
    %c96 = arith.constant 96 : index
    %17 = vector.load %arg13[%c0_17, %c96] : memref<38x512xbf16, #tpu.memory_space<vmem>>, vector<38x32xbf16>
    tpu.vector_store %arg13[%c0_17, %c96], %16 {strides = array<i32>} : memref<38x512xbf16, #tpu.memory_space<vmem>>, vector<38x32xbf16>,
    %c50 = arith.constant 50 : index
    %c0_18 = arith.constant 0 : index
    %18 = vector.load %arg12[%c50, %c0_18] : memref<200x32xbf16, #tpu.memory_space<vmem>>, vector<38x32xbf16>
    %c0_19 = arith.constant 0 : index
    %c128 = arith.constant 128 : index
    %19 = vector.load %arg13[%c0_19, %c128] : memref<38x512xbf16, #tpu.memory_space<vmem>>, vector<38x32xbf16>
    tpu.vector_store %arg13[%c0_19, %c128], %18 {strides = array<i32>} : memref<38x512xbf16, #tpu.memory_space<vmem>>, vector<38x32xbf16>,
    %c52 = arith.constant 52 : index
    %c0_20 = arith.constant 0 : index
    %20 = vector.load %arg12[%c52, %c0_20] : memref<200x32xbf16, #tpu.memory_space<vmem>>, vector<38x32xbf16>
    %c0_21 = arith.constant 0 : index
    %c160 = arith.constant 160 : index
    %21 = vector.load %arg13[%c0_21, %c160] : memref<38x512xbf16, #tpu.memory_space<vmem>>, vector<38x32xbf16>
    tpu.vector_store %arg13[%c0_21, %c160], %20 {strides = array<i32>} : memref<38x512xbf16, #tpu.memory_space<vmem>>, vector<38x32xbf16>,
    %c60 = arith.constant 60 : index
    %c0_22 = arith.constant 0 : index
    %22 = vector.load %arg12[%c60, %c0_22] : memref<200x32xbf16, #tpu.memory_space<vmem>>, vector<38x32xbf16>
    %c0_23 = arith.constant 0 : index
    %c192 = arith.constant 192 : index
    %23 = vector.load %arg13[%c0_23, %c192] : memref<38x512xbf16, #tpu.memory_space<vmem>>, vector<38x32xbf16>
    tpu.vector_store %arg13[%c0_23, %c192], %22 {strides = array<i32>} : memref<38x512xbf16, #tpu.memory_space<vmem>>, vector<38x32xbf16>,
    %c62 = arith.constant 62 : index
    %c0_24 = arith.constant 0 : index
    %24 = vector.load %arg12[%c62, %c0_24] : memref<200x32xbf16, #tpu.memory_space<vmem>>, vector<38x32xbf16>
    %c0_25 = arith.constant 0 : index
    %c224 = arith.constant 224 : index
    %25 = vector.load %arg13[%c0_25, %c224] : memref<38x512xbf16, #tpu.memory_space<vmem>>, vector<38x32xbf16>
    tpu.vector_store %arg13[%c0_25, %c224], %24 {strides = array<i32>} : memref<38x512xbf16, #tpu.memory_space<vmem>>, vector<38x32xbf16>,
    %c100 = arith.constant 100 : index
    %c0_26 = arith.constant 0 : index
    %26 = vector.load %arg12[%c100, %c0_26] : memref<200x32xbf16, #tpu.memory_space<vmem>>, vector<38x32xbf16>
    %c0_27 = arith.constant 0 : index
    %c256 = arith.constant 256 : index
    %27 = vector.load %arg13[%c0_27, %c256] : memref<38x512xbf16, #tpu.memory_space<vmem>>, vector<38x32xbf16>
    tpu.vector_store %arg13[%c0_27, %c256], %26 {strides = array<i32>} : memref<38x512xbf16, #tpu.memory_space<vmem>>, vector<38x32xbf16>,
    %c102 = arith.constant 102 : index
    %c0_28 = arith.constant 0 : index
    %28 = vector.load %arg12[%c102, %c0_28] : memref<200x32xbf16, #tpu.memory_space<vmem>>, vector<38x32xbf16>
    %c0_29 = arith.constant 0 : index
    %c288 = arith.constant 288 : index
    %29 = vector.load %arg13[%c0_29, %c288] : memref<38x512xbf16, #tpu.memory_space<vmem>>, vector<38x32xbf16>
    tpu.vector_store %arg13[%c0_29, %c288], %28 {strides = array<i32>} : memref<38x512xbf16, #tpu.memory_space<vmem>>, vector<38x32xbf16>,
    %c110 = arith.constant 110 : index
    %c0_30 = arith.constant 0 : index
    %30 = vector.load %arg12[%c110, %c0_30] : memref<200x32xbf16, #tpu.memory_space<vmem>>, vector<38x32xbf16>
    %c0_31 = arith.constant 0 : index
    %c320 = arith.constant 320 : index
    %31 = vector.load %arg13[%c0_31, %c320] : memref<38x512xbf16, #tpu.memory_space<vmem>>, vector<38x32xbf16>
    tpu.vector_store %arg13[%c0_31, %c320], %30 {strides = array<i32>} : memref<38x512xbf16, #tpu.memory_space<vmem>>, vector<38x32xbf16>,
    %c112 = arith.constant 112 : index
    %c0_32 = arith.constant 0 : index
    %32 = vector.load %arg12[%c112, %c0_32] : memref<200x32xbf16, #tpu.memory_space<vmem>>, vector<38x32xbf16>
    %c0_33 = arith.constant 0 : index
    %c352 = arith.constant 352 : index
    %33 = vector.load %arg13[%c0_33, %c352] : memref<38x512xbf16, #tpu.memory_space<vmem>>, vector<38x32xbf16>
    tpu.vector_store %arg13[%c0_33, %c352], %32 {strides = array<i32>} : memref<38x512xbf16, #tpu.memory_space<vmem>>, vector<38x32xbf16>,
    %c150 = arith.constant 150 : index
    %c0_34 = arith.constant 0 : index
    %34 = vector.load %arg12[%c150, %c0_34] : memref<200x32xbf16, #tpu.memory_space<vmem>>, vector<38x32xbf16>
    %c0_35 = arith.constant 0 : index
    %c384 = arith.constant 384 : index
    %35 = vector.load %arg13[%c0_35, %c384] : memref<38x512xbf16, #tpu.memory_space<vmem>>, vector<38x32xbf16>
    tpu.vector_store %arg13[%c0_35, %c384], %34 {strides = array<i32>} : memref<38x512xbf16, #tpu.memory_space<vmem>>, vector<38x32xbf16>,
    %c152 = arith.constant 152 : index
    %c0_36 = arith.constant 0 : index
    %36 = vector.load %arg12[%c152, %c0_36] : memref<200x32xbf16, #tpu.memory_space<vmem>>, vector<38x32xbf16>
    %c0_37 = arith.constant 0 : index
    %c416 = arith.constant 416 : index
    %37 = vector.load %arg13[%c0_37, %c416] : memref<38x512xbf16, #tpu.memory_space<vmem>>, vector<38x32xbf16>
    tpu.vector_store %arg13[%c0_37, %c416], %36 {strides = array<i32>} : memref<38x512xbf16, #tpu.memory_space<vmem>>, vector<38x32xbf16>,
    %c160_38 = arith.constant 160 : index
    %c0_39 = arith.constant 0 : index
    %38 = vector.load %arg12[%c160_38, %c0_39] : memref<200x32xbf16, #tpu.memory_space<vmem>>, vector<38x32xbf16>
    %c0_40 = arith.constant 0 : index
    %c448 = arith.constant 448 : index
    %39 = vector.load %arg13[%c0_40, %c448] : memref<38x512xbf16, #tpu.memory_space<vmem>>, vector<38x32xbf16>
    tpu.vector_store %arg13[%c0_40, %c448], %38 {strides = array<i32>} : memref<38x512xbf16, #tpu.memory_space<vmem>>, vector<38x32xbf16>,
    %c162 = arith.constant 162 : index
    %c0_41 = arith.constant 0 : index
    %40 = vector.load %arg12[%c162, %c0_41] : memref<200x32xbf16, #tpu.memory_space<vmem>>, vector<38x32xbf16>
    %c0_42 = arith.constant 0 : index
    %c480 = arith.constant 480 : index
    %41 = vector.load %arg13[%c0_42, %c480] : memref<38x512xbf16, #tpu.memory_space<vmem>>, vector<38x32xbf16>
    tpu.vector_store %arg13[%c0_42, %c480], %40 {strides = array<i32>} : memref<38x512xbf16, #tpu.memory_space<vmem>>, vector<38x32xbf16>,
    %c0_43 = arith.constant 0 : index
    %c0_44 = arith.constant 0 : index
    %42 = vector.load %arg13[%c0_43, %c0_44] : memref<38x512xbf16, #tpu.memory_space<vmem>>, vector<38x512xbf16>
    %c0_45 = arith.constant 0 : index
    %c0_46 = arith.constant 0 : index
    %43 = vector.load %arg3[%c0_45, %c0_46] : memref<512x64xbf16, #tpu.memory_space<vmem>>, vector<512x64xbf16>
    %cst_47 = arith.constant dense<0.000000e+00> : vector<38x64xf32>
    %44 = tpu.matmul %42, %43, %cst_47 {dimension_numbers = #tpu.dot_dimension_numbers<[1], [0], [0], [1], [0, 0, 1, 1], [], []>} : vector<38x512xbf16>, vector<512x64xbf16>, vector<38x64xf32> -> vector<38x64xf32>
    %c0_48 = arith.constant 0 : index
    %c0_49 = arith.constant 0 : index
    %45 = vector.load %arg4[%c0_48, %c0_49] : memref<1x64xf32, #tpu.memory_space<vmem>>, vector<1x64xf32>
    %46 = vector.broadcast %45 : vector<1x64xf32> to vector<38x64xf32>
    %47 = arith.addf %44, %46 : vector<38x64xf32>
    %cst_50 = arith.constant 0.000000e+00 : f32
    %48 = vector.broadcast %cst_50 : f32 to vector<38x64xf32>
    %49 = arith.maximumf %47, %48 : vector<38x64xf32>
    %50 = arith.truncf %49 : vector<38x64xf32> to vector<38x64xbf16>
    %c0_51 = arith.constant 0 : index
    %c0_52 = arith.constant 0 : index
    %51 = vector.load %arg14[%c0_51, %c0_52] : memref<38x64xbf16, #tpu.memory_space<vmem>>, vector<38x64xbf16>
    tpu.vector_store %arg14[%c0_51, %c0_52], %50 {strides = array<i32>} : memref<38x64xbf16, #tpu.memory_space<vmem>>, vector<38x64xbf16>,
    %c0_53 = arith.constant 0 : index
    %c0_54 = arith.constant 0 : index
    %52 = vector.load %arg14[%c0_53, %c0_54] : memref<38x64xbf16, #tpu.memory_space<vmem>>, vector<14x64xbf16>
    %c0_55 = arith.constant 0 : index
    %c0_56 = arith.constant 0 : index
    %53 = vector.load %arg15[%c0_55, %c0_56] : memref<14x576xbf16, #tpu.memory_space<vmem>>, vector<14x64xbf16>
    tpu.vector_store %arg15[%c0_55, %c0_56], %52 {strides = array<i32>} : memref<14x576xbf16, #tpu.memory_space<vmem>>, vector<14x64xbf16>,
    %c2_57 = arith.constant 2 : index
    %c0_58 = arith.constant 0 : index
    %54 = vector.load %arg14[%c2_57, %c0_58] : memref<38x64xbf16, #tpu.memory_space<vmem>>, vector<14x64xbf16>
    %c0_59 = arith.constant 0 : index
    %c64_60 = arith.constant 64 : index
    %55 = vector.load %arg15[%c0_59, %c64_60] : memref<14x576xbf16, #tpu.memory_space<vmem>>, vector<14x64xbf16>
    tpu.vector_store %arg15[%c0_59, %c64_60], %54 {strides = array<i32>} : memref<14x576xbf16, #tpu.memory_space<vmem>>, vector<14x64xbf16>,
    %c4 = arith.constant 4 : index
    %c0_61 = arith.constant 0 : index
    %56 = vector.load %arg14[%c4, %c0_61] : memref<38x64xbf16, #tpu.memory_space<vmem>>, vector<14x64xbf16>
    %c0_62 = arith.constant 0 : index
    %c128_63 = arith.constant 128 : index
    %57 = vector.load %arg15[%c0_62, %c128_63] : memref<14x576xbf16, #tpu.memory_space<vmem>>, vector<14x64xbf16>
    tpu.vector_store %arg15[%c0_62, %c128_63], %56 {strides = array<i32>} : memref<14x576xbf16, #tpu.memory_space<vmem>>, vector<14x64xbf16>,
    %c10_64 = arith.constant 10 : index
    %c0_65 = arith.constant 0 : index
    %58 = vector.load %arg14[%c10_64, %c0_65] : memref<38x64xbf16, #tpu.memory_space<vmem>>, vector<14x64xbf16>
    %c0_66 = arith.constant 0 : index
    %c192_67 = arith.constant 192 : index
    %59 = vector.load %arg15[%c0_66, %c192_67] : memref<14x576xbf16, #tpu.memory_space<vmem>>, vector<14x64xbf16>
    tpu.vector_store %arg15[%c0_66, %c192_67], %58 {strides = array<i32>} : memref<14x576xbf16, #tpu.memory_space<vmem>>, vector<14x64xbf16>,
    %c12_68 = arith.constant 12 : index
    %c0_69 = arith.constant 0 : index
    %60 = vector.load %arg14[%c12_68, %c0_69] : memref<38x64xbf16, #tpu.memory_space<vmem>>, vector<14x64xbf16>
    %c0_70 = arith.constant 0 : index
    %c256_71 = arith.constant 256 : index
    %61 = vector.load %arg15[%c0_70, %c256_71] : memref<14x576xbf16, #tpu.memory_space<vmem>>, vector<14x64xbf16>
    tpu.vector_store %arg15[%c0_70, %c256_71], %60 {strides = array<i32>} : memref<14x576xbf16, #tpu.memory_space<vmem>>, vector<14x64xbf16>,
    %c14 = arith.constant 14 : index
    %c0_72 = arith.constant 0 : index
    %62 = vector.load %arg14[%c14, %c0_72] : memref<38x64xbf16, #tpu.memory_space<vmem>>, vector<14x64xbf16>
    %c0_73 = arith.constant 0 : index
    %c320_74 = arith.constant 320 : index
    %63 = vector.load %arg15[%c0_73, %c320_74] : memref<14x576xbf16, #tpu.memory_space<vmem>>, vector<14x64xbf16>
    tpu.vector_store %arg15[%c0_73, %c320_74], %62 {strides = array<i32>} : memref<14x576xbf16, #tpu.memory_space<vmem>>, vector<14x64xbf16>,
    %c20 = arith.constant 20 : index
    %c0_75 = arith.constant 0 : index
    %64 = vector.load %arg14[%c20, %c0_75] : memref<38x64xbf16, #tpu.memory_space<vmem>>, vector<14x64xbf16>
    %c0_76 = arith.constant 0 : index
    %c384_77 = arith.constant 384 : index
    %65 = vector.load %arg15[%c0_76, %c384_77] : memref<14x576xbf16, #tpu.memory_space<vmem>>, vector<14x64xbf16>
    tpu.vector_store %arg15[%c0_76, %c384_77], %64 {strides = array<i32>} : memref<14x576xbf16, #tpu.memory_space<vmem>>, vector<14x64xbf16>,
    %c22 = arith.constant 22 : index
    %c0_78 = arith.constant 0 : index
    %66 = vector.load %arg14[%c22, %c0_78] : memref<38x64xbf16, #tpu.memory_space<vmem>>, vector<14x64xbf16>
    %c0_79 = arith.constant 0 : index
    %c448_80 = arith.constant 448 : index
    %67 = vector.load %arg15[%c0_79, %c448_80] : memref<14x576xbf16, #tpu.memory_space<vmem>>, vector<14x64xbf16>
    tpu.vector_store %arg15[%c0_79, %c448_80], %66 {strides = array<i32>} : memref<14x576xbf16, #tpu.memory_space<vmem>>, vector<14x64xbf16>,
    %c24 = arith.constant 24 : index
    %c0_81 = arith.constant 0 : index
    %68 = vector.load %arg14[%c24, %c0_81] : memref<38x64xbf16, #tpu.memory_space<vmem>>, vector<14x64xbf16>
    %c0_82 = arith.constant 0 : index
    %c512 = arith.constant 512 : index
    %69 = vector.load %arg15[%c0_82, %c512] : memref<14x576xbf16, #tpu.memory_space<vmem>>, vector<14x64xbf16>
    tpu.vector_store %arg15[%c0_82, %c512], %68 {strides = array<i32>} : memref<14x576xbf16, #tpu.memory_space<vmem>>, vector<14x64xbf16>,
    %c0_83 = arith.constant 0 : index
    %c0_84 = arith.constant 0 : index
    %70 = vector.load %arg15[%c0_83, %c0_84] : memref<14x576xbf16, #tpu.memory_space<vmem>>, vector<14x576xbf16>
    %c0_85 = arith.constant 0 : index
    %c0_86 = arith.constant 0 : index
    %71 = vector.load %arg5[%c0_85, %c0_86] : memref<576x64xbf16, #tpu.memory_space<vmem>>, vector<576x64xbf16>
    %cst_87 = arith.constant dense<0.000000e+00> : vector<14x64xf32>
    %72 = tpu.matmul %70, %71, %cst_87 {dimension_numbers = #tpu.dot_dimension_numbers<[1], [0], [0], [1], [0, 0, 1, 1], [], []>} : vector<14x576xbf16>, vector<576x64xbf16>, vector<14x64xf32> -> vector<14x64xf32>
    %c0_88 = arith.constant 0 : index
    %c0_89 = arith.constant 0 : index
    %73 = vector.load %arg6[%c0_88, %c0_89] : memref<1x64xf32, #tpu.memory_space<vmem>>, vector<1x64xf32>
    %74 = vector.broadcast %73 : vector<1x64xf32> to vector<14x64xf32>
    %75 = arith.addf %72, %74 : vector<14x64xf32>
    %cst_90 = arith.constant 0.000000e+00 : f32
    %76 = vector.broadcast %cst_90 : f32 to vector<14x64xf32>
    %77 = arith.maximumf %75, %76 : vector<14x64xf32>
    %78 = arith.truncf %77 : vector<14x64xf32> to vector<14x64xbf16>
    %c0_91 = arith.constant 0 : index
    %c0_92 = arith.constant 0 : index
    %79 = vector.load %arg16[%c0_91, %c0_92] : memref<14x64xbf16, #tpu.memory_space<vmem>>, vector<14x64xbf16>
    tpu.vector_store %arg16[%c0_91, %c0_92], %78 {strides = array<i32>} : memref<14x64xbf16, #tpu.memory_space<vmem>>, vector<14x64xbf16>,
    %c0_93 = arith.constant 0 : index
    %c0_94 = arith.constant 0 : index
    %80 = vector.load %arg16[%c0_93, %c0_94] : memref<14x64xbf16, #tpu.memory_space<vmem>>, vector<2x64xbf16>
    %c0_95 = arith.constant 0 : index
    %c0_96 = arith.constant 0 : index
    %81 = vector.load %arg17[%c0_95, %c0_96] : memref<2x256xbf16, #tpu.memory_space<vmem>>, vector<2x64xbf16>
    tpu.vector_store %arg17[%c0_95, %c0_96], %80 {strides = array<i32>} : memref<2x256xbf16, #tpu.memory_space<vmem>>, vector<2x64xbf16>,
    %c2_97 = arith.constant 2 : index
    %c0_98 = arith.constant 0 : index
    %82 = vector.load %arg16[%c2_97, %c0_98] : memref<14x64xbf16, #tpu.memory_space<vmem>>, vector<2x64xbf16>
    %c0_99 = arith.constant 0 : index
    %c64_100 = arith.constant 64 : index
    %83 = vector.load %arg17[%c0_99, %c64_100] : memref<2x256xbf16, #tpu.memory_space<vmem>>, vector<2x64xbf16>
    tpu.vector_store %arg17[%c0_99, %c64_100], %82 {strides = array<i32>} : memref<2x256xbf16, #tpu.memory_space<vmem>>, vector<2x64xbf16>,
    %c10_101 = arith.constant 10 : index
    %c0_102 = arith.constant 0 : index
    %84 = vector.load %arg16[%c10_101, %c0_102] : memref<14x64xbf16, #tpu.memory_space<vmem>>, vector<2x64xbf16>
    %c0_103 = arith.constant 0 : index
    %c128_104 = arith.constant 128 : index
    %85 = vector.load %arg17[%c0_103, %c128_104] : memref<2x256xbf16, #tpu.memory_space<vmem>>, vector<2x64xbf16>
    tpu.vector_store %arg17[%c0_103, %c128_104], %84 {strides = array<i32>} : memref<2x256xbf16, #tpu.memory_space<vmem>>, vector<2x64xbf16>,
    %c12_105 = arith.constant 12 : index
    %c0_106 = arith.constant 0 : index
    %86 = vector.load %arg16[%c12_105, %c0_106] : memref<14x64xbf16, #tpu.memory_space<vmem>>, vector<2x64xbf16>
    %c0_107 = arith.constant 0 : index
    %c192_108 = arith.constant 192 : index
    %87 = vector.load %arg17[%c0_107, %c192_108] : memref<2x256xbf16, #tpu.memory_space<vmem>>, vector<2x64xbf16>
    tpu.vector_store %arg17[%c0_107, %c192_108], %86 {strides = array<i32>} : memref<2x256xbf16, #tpu.memory_space<vmem>>, vector<2x64xbf16>,
    %c0_109 = arith.constant 0 : index
    %c0_110 = arith.constant 0 : index
    %88 = vector.load %arg17[%c0_109, %c0_110] : memref<2x256xbf16, #tpu.memory_space<vmem>>, vector<2x256xbf16>
    %c0_111 = arith.constant 0 : index
    %c0_112 = arith.constant 0 : index
    %89 = vector.load %arg7[%c0_111, %c0_112] : memref<256x512xbf16, #tpu.memory_space<vmem>>, vector<256x512xbf16>
    %cst_113 = arith.constant dense<0.000000e+00> : vector<2x512xf32>
    %90 = tpu.matmul %88, %89, %cst_113 {dimension_numbers = #tpu.dot_dimension_numbers<[1], [0], [0], [1], [0, 0, 1, 1], [], []>} : vector<2x256xbf16>, vector<256x512xbf16>, vector<2x512xf32> -> vector<2x512xf32>
    %c0_114 = arith.constant 0 : index
    %c0_115 = arith.constant 0 : index
    %91 = vector.load %arg8[%c0_114, %c0_115] : memref<1x512xf32, #tpu.memory_space<vmem>>, vector<1x512xf32>
    %92 = vector.broadcast %91 : vector<1x512xf32> to vector<2x512xf32>
    %93 = arith.addf %90, %92 : vector<2x512xf32>
    %cst_116 = arith.constant 0.000000e+00 : f32
    %94 = vector.broadcast %cst_116 : f32 to vector<2x512xf32>
    %95 = arith.maximumf %93, %94 : vector<2x512xf32>
    %96 = arith.truncf %95 : vector<2x512xf32> to vector<2x512xbf16>
    %c0_117 = arith.constant 0 : index
    %c0_118 = arith.constant 0 : index
    %97 = vector.load %arg9[%c0_117, %c0_118] : memref<512x128xbf16, #tpu.memory_space<vmem>>, vector<512x128xbf16>
    %cst_119 = arith.constant dense<0.000000e+00> : vector<2x128xf32>
    %98 = tpu.matmul %96, %97, %cst_119 {dimension_numbers = #tpu.dot_dimension_numbers<[1], [0], [0], [1], [0, 0, 1, 1], [], []>} : vector<2x512xbf16>, vector<512x128xbf16>, vector<2x128xf32> -> vector<2x128xf32>
    %c0_120 = arith.constant 0 : index
    %c0_121 = arith.constant 0 : index
    %99 = vector.load %arg10[%c0_120, %c0_121] : memref<1x128xf32, #tpu.memory_space<vmem>>, vector<1x128xf32>
    %100 = vector.broadcast %99 : vector<1x128xf32> to vector<2x128xf32>
    %101 = arith.addf %98, %100 : vector<2x128xf32>
    %c0_122 = arith.constant 0 : index
    %c0_123 = arith.constant 0 : index
    %102 = vector.load %arg11[%c0_122, %c0_123] : memref<2x128xf32, #tpu.memory_space<vmem>>, vector<2x128xf32>
    tpu.vector_store %arg11[%c0_122, %c0_123], %101 {strides = array<i32>} : memref<2x128xf32, #tpu.memory_space<vmem>>, vector<2x128xf32>,
    return
  }
}

</mosaic_0001>

<bundles_post_ra>
// kernel: dqn_forward.1
= control target key start
LH: loop header
LB: loop body
LE: loop exit
PB: predicated region body
PF: predicated region fallthrough
CT: control target
= control target key end

     0   :  { %s5417_s0 = inlined_call_operand.vmem [shape: bf16[200,256], index: 0, kind: input, shape index: {}]   ;;  %s5418_s1 = inlined_call_operand.vmem [shape: bf16[256,32], index: 1, kind: input, shape index: {}]   ;;  %s5419_s2 = inlined_call_operand.vmem [shape: f32[1,32], index: 2, kind: input, shape index: {}]   ;;  %s5420_s3 = inlined_call_operand.vmem [shape: bf16[512,64], index: 3, kind: input, shape index: {}]   ;;  %s5421_s4 = inlined_call_operand.vmem [shape: f32[1,64], index: 4, kind: input, shape index: {}]   ;;  %s5422_s5 = inlined_call_operand.vmem [shape: bf16[576,64], index: 5, kind: input, shape index: {}]   ;;  %s5423_s6 = inlined_call_operand.vmem [shape: f32[1,64], index: 6, kind: input, shape index: {}]   ;;  %s5424_s7 = inlined_call_operand.vmem [shape: bf16[256,512], index: 7, kind: input, shape index: {}]   ;;  %s5425_s8 = inlined_call_operand.vmem [shape: f32[1,512], index: 8, kind: input, shape index: {}]   ;;  %s5426_s9 = inlined_call_operand.vmem [shape: bf16[512,128], index: 9, kind: input, shape index: {}]   ;;  %s5427_s10 = inlined_call_operand.vmem [shape: f32[1,128], index: 10, kind: input, shape index: {}]   ;;  %s5428_s11 = inlined_call_operand.hbm [shape: f32[2,128], index: 11, kind: output, shape index: {}]  }
   0x1   :  { %v3869_v0 = vld [vmem:[%s5418_s1 + $0x40] sm:$0xff]   ;;  %v3871_v2 = vld [vmem:[%s5418_s1 + $0x48] sm:$0xff]   ;;  %v3873_v4 = vld [vmem:[%s5418_s1 + $0x50] sm:$0xff]  }
   0x2   :  { %v3870_v1 = vld [vmem:[%s5418_s1] sm:$0xff]   ;;  %3595 = vmatprep.subr.bf16.mxu0 %v3869_v0  ;;  %v3872_v3 = vld [vmem:[%s5418_s1 + $0x8] sm:$0xff]   ;;  %v3874_v5 = vld [vmem:[%s5418_s1 + $0x10] sm:$0xff]  }
   0x3   :  { %3596 = vmatpush3.bf16.msra.mxu0 %v3870_v1  ;;  %v3875_v6 = vld [vmem:[%s5418_s1 + $0x58] sm:$0xff]   ;;  %v3877_v8 = vld [vmem:[%s5418_s1 + $0x60] sm:$0xff]   ;;  %v3879_v10 = vld [vmem:[%s5418_s1 + $0x68] sm:$0xff]  }
   0x4   :  { %3597 = vmatprep.subr.bf16.mxu0 %v3871_v2  ;;  %v3876_v7 = vld [vmem:[%s5418_s1 + $0x18] sm:$0xff]   ;;  %v3878_v9 = vld [vmem:[%s5418_s1 + $0x20] sm:$0xff]   ;;  %v3880_v12 = vld [vmem:[%s5418_s1 + $0x28] sm:$0xff]  }
   0x5   :  { %v3887_v11 = vld [vmem:[%s5417_s0 + $0x4] ss:$8 sps:$4 sm:$0xff]   ;;  %v3881_v13 = vld [vmem:[%s5418_s1 + $0x70] sm:$0xff]   ;;  %v3883_v15 = vld [vmem:[%s5418_s1 + $0x78] sm:$0xff]  }
   0x6   :  { %359 = vmatprep.mubr.bf16.mxu0 %v3887_v11  ;;  %v3882_v14 = vld [vmem:[%s5418_s1 + $0x30] sm:$0xff]   ;;  %v3884_v16 = vld [vmem:[%s5418_s1 + $0x38] sm:$0xff]   ;;  %v3885_v17 = vld [vmem:[%s5417_s0] ss:$8 sps:$4 sm:$0xff]  }
   0x7   :  { %3598 = vmatpush3.bf16.msra.mxu0 %v3872_v3  ;;  %v3888_v18 = vld [vmem:[%s5417_s0 + $0x14] ss:$8 sps:$4 sm:$0xff]   ;;  %v3890_v19 = vld [vmem:[%s5417_s0 + $0x10] ss:$8 sps:$4 sm:$0xff]   ;;  %v3891_v20 = vld [vmem:[%s5417_s0 + $0x24] ss:$8 sps:$4 sm:$0xff]  }
   0x8   :  { %3599 = vmatprep.subr.bf16.mxu0 %v3873_v4  ;;  %v3893_v21 = vld [vmem:[%s5417_s0 + $0x20] ss:$8 sps:$4 sm:$0xff]   ;;  %v3894_v22 = vld [vmem:[%s5417_s0 + $0x34] ss:$8 sps:$4 sm:$0xff]   ;;  %v3896_v23 = vld [vmem:[%s5417_s0 + $0x30] ss:$8 sps:$4 sm:$0xff]  }
   0x9   :  { %v3897_v24 = vld [vmem:[%s5417_s0 + $0x44] ss:$8 sps:$4 sm:$0xff]   ;;  %v3899_v25 = vld [vmem:[%s5417_s0 + $0x40] ss:$8 sps:$4 sm:$0xff]   ;;  %v3900_v26 = vld [vmem:[%s5417_s0 + $0x54] ss:$8 sps:$4 sm:$0xff]  }
   0xa   :  { %v3902_v27 = vld [vmem:[%s5417_s0 + $0x50] ss:$8 sps:$4 sm:$0xff]   ;;  %v3903_v28 = vld [vmem:[%s5417_s0 + $0x64] ss:$8 sps:$4 sm:$0xff]   ;;  %v3905_v29 = vld [vmem:[%s5417_s0 + $0x60] ss:$8 sps:$4 sm:$0xff]  }
   0xb   :  { %3600 = vmatpush3.bf16.msra.mxu0 %v3874_v5  ;;  %v3906_v30 = vld [vmem:[%s5417_s0 + $0x74] ss:$8 sps:$4 sm:$0xff]   ;;  %v3908_v31 = vld [vmem:[%s5417_s0 + $0x70] ss:$8 sps:$4 sm:$0xff]   ;;  %v3909_v32 = vld [vmem:[%s5417_s0 + $0x84] ss:$8 sps:$4 sm:$0xff]  }
   0xc   :  { %3601 = vmatprep.subr.bf16.mxu0 %v3875_v6  ;;  %v3911_v33 = vld [vmem:[%s5417_s0 + $0x80] ss:$8 sps:$4 sm:$0xff]   ;;  %v3912_v34 = vld [vmem:[%s5417_s0 + $0x94] ss:$8 sps:$4 sm:$0xff]   ;;  %v3914_v35 = vld [vmem:[%s5417_s0 + $0x90] ss:$8 sps:$4 sm:$0xff]  }
   0xd   :  { %v3915_v36 = vld [vmem:[%s5417_s0 + $0xa4] ss:$8 sps:$4 sm:$0xff]   ;;  %v3917_v37 = vld [vmem:[%s5417_s0 + $0xa0] ss:$8 sps:$4 sm:$0xff]   ;;  %v3918_v38 = vld [vmem:[%s5417_s0 + $0xb4] ss:$8 sps:$4 sm:$0xff]  }
   0xe   :  { %v64_v39 = vld [vmem:[%s5417_s0 + $0xc0] sm:$0xff]  ;;  %v3920_v40 = vld [vmem:[%s5417_s0 + $0xb0] ss:$8 sps:$4 sm:$0xff]  }
   0xf   :  { %3602 = vmatpush3.bf16.msra.mxu0 %v3876_v7  ;;  %v3306_v41 = vcombine.high %v64_v39, %v64_v39 }
  0x10   :  { %3603 = vmatprep.subr.bf16.mxu0 %v3877_v8 }
  0x13   :  { %3604 = vmatpush3.bf16.msra.mxu0 %v3878_v9 }
  0x14   :  { %3605 = vmatprep.subr.bf16.mxu0 %v3879_v10 }
  0x17   :  { %3606 = vmatpush3.bf16.msra.mxu0 %v3880_v12 }
  0x18   :  { %3607 = vmatprep.subr.bf16.mxu0 %v3881_v13 }
  0x1b   :  { %3608 = vmatpush3.bf16.msra.mxu0 %v3882_v14 }
  0x1c   :  { %3609 = vmatprep.subr.bf16.mxu0 %v3883_v15 }
  0x1f   :  { %3610 = vmatpush3.bf16.msra.mxu0 %v3884_v16 }
  0x22   :  { %360 = vmatmul.mubr.bf16.vlgmr.msra.gmra.mrb[0].mxu0 %v3885_v17 }
  0x23   :  { %367 = vmatprep.mubr.bf16.mxu0 %v3888_v18 }
  0x2a   :  { %368 = vmatmul.mubr.bf16.gmra.mrb[4].mxu0 %v3890_v19 }
  0x2b   :  { %375 = vmatprep.mubr.bf16.mxu0 %v3891_v20 }
  0x32   :  { %376 = vmatmul.mubr.bf16.gmra.mrb[8].mxu0 %v3893_v21 }
  0x33   :  { %383 = vmatprep.mubr.bf16.mxu0 %v3894_v22 }
  0x3a   :  { %384 = vmatmul.mubr.bf16.gmra.mrb[12].mxu0 %v3896_v23 }
  0x3b   :  { %391 = vmatprep.mubr.bf16.mxu0 %v3897_v24 }
  0x42   :  { %392 = vmatmul.mubr.bf16.gmra.mrb[16].mxu0 %v3899_v25 }
  0x43   :  { %399 = vmatprep.mubr.bf16.mxu0 %v3900_v26 }
  0x4a   :  { %400 = vmatmul.mubr.bf16.gmra.mrb[20].mxu0 %v3902_v27 }
  0x4b   :  { %407 = vmatprep.mubr.bf16.mxu0 %v3903_v28 }
  0x52   :  { %408 = vmatmul.mubr.bf16.gmra.mrb[24].mxu0 %v3905_v29 }
  0x53   :  { %415 = vmatprep.mubr.bf16.mxu0 %v3906_v30 }
  0x5a   :  { %416 = vmatmul.mubr.bf16.gmra.mrb[28].mxu0 %v3908_v31 }
  0x5b   :  { %423 = vmatprep.mubr.bf16.mxu0 %v3909_v32 }
  0x62   :  { %424 = vmatmul.mubr.bf16.gmra.mrb[32].mxu0 %v3911_v33 }
  0x63   :  { %431 = vmatprep.mubr.bf16.mxu0 %v3912_v34 }
  0x6a   :  { %432 = vmatmul.mubr.bf16.gmra.mrb[36].mxu0 %v3914_v35 }
  0x6b   :  { %439 = vmatprep.mubr.bf16.mxu0 %v3915_v36 }
  0x72   :  { %440 = vmatmul.mubr.bf16.gmra.mrb[40].mxu0 %v3917_v37 }
  0x73   :  { %447 = vmatprep.mubr.bf16.mxu0 %v3918_v38 }
  0x74   :  { %16 = vsyncpa [#allocation9], 0  ;;  %v3305_v42 = vcombine.low %v64_v39, %v64_v39  ;;  %v4356_v44 = vld [vmem:[%s5419_s2] ss:$0 sm:$0xff]  ;;  %vm589_vm0 = vcmask 257024   ;;  %vm636_vm1 = vcmask 1042432  }
  0x75   :  { %vm637_vm2 = vcmask 1046532   ;;  %s4163_s0 = smov 32   ;;  %vm733_vm4 = vcmask 1041408   ;;  %vm734_vm5 = vcmask 1045508   ;;  %s4164_s2 = smov 64   ;;  %vm624_vm6 = vcmask 256000  }
  0x76   :  { %vm4366_vm3 = vmor %vm636_vm1, %vm637_vm2  ;;  %s4165_s22 = smov 96   ;;  %vm916_vm8 = vcmask 1040384   ;;  %vm917_vm9 = vcmask 1044484   ;;  %vm668_vm11 = vcmask 519424   ;;  %vm714_vm12 = vcmask 781824  }
  0x77   :  { %vm4405_vm7 = vmor %vm733_vm4, %vm734_vm5  ;;  %vm767_vm13 = vcmask 1044224   ;;  %vm673_vm14 = vcmask 518400   ;;  %vm719_vm15 = vcmask 780800   ;;  %vm4167_vm1 = vmmov 0  }
  0x78   :  { %vm4585_vm10 = vmor %vm916_vm8, %vm917_vm9  ;;  %vm1726_vm2 = vcmask 519168   ;;  %vm1731_vm4 = vcmask 518144   ;;  %vm1752_vm5 = vcmask 1043968   ;;  %vm2358_vm8 = vcmask 1040896  }
  0x7a   :  { %448 = vmatmul.mubr.bf16.gmra.mrb[44].mxu0 %v3920_v40 }
  0x7b   :  { %455 = vmatprep.mubr.bf16.mxu0 %v3306_v41 }
  0x82   :  { %456 = vmatmul.mubr.bf16.gmra.mrb[48].mxu0 %v3305_v42 }
  0xf5   :  { %v3611_v43 = vpop.f32.mrb[0].mxu0 }
  0xf6   :  { %v3612_v45 = vpop.f32.mrb[1].mxu0 }
  0xf7   :  { %v3613_v46 = vadd.f32 %v3612_v45, %v3611_v43  ;;  %v3614_v47 = vpop.f32.mrb[2].mxu0 }
  0xf8   :  { %v3615_v48 = vpop.f32.mrb[3].mxu0 }
  0xf9   :  { %v362_v49 = vadd.f32 %v3613_v46, %v4356_v44  ;;  %v3616_v50 = vadd.f32 %v3615_v48, %v3614_v47 }
  0xfb   :  { %v463_v51 = vmax.f32 %v362_v49, 0.0  ;;  %v365_v52 = vadd.f32 %v3616_v50, %v4356_v44 }
  0xfd   :  { %v3563_v53 = vpack.c.bf16 %v463_v51, %v463_v51  ;;  %v464_v54 = vmax.f32 %v365_v52, 0.0  ;;  %v3617_v55 = vpop.f32.mrb[4].mxu0 }
  0xfe   :  { %v3618_v56 = vpop.f32.mrb[5].mxu0 }
  0xff   :  { %590 = vst.msk [vmem:[#allocation2] sm:$0xf] %vm589_vm0, %v3563_v53  ;;  %v3564_v57 = vpack.c.bf16 %v464_v54, %v464_v54  ;;  %v3619_v58 = vadd.f32 %v3618_v56, %v3617_v55  ;;  %v3620_v59 = vpop.f32.mrb[6].mxu0 }
 0x100   :  { %v3621_v60 = vpop.f32.mrb[7].mxu0 }
 0x101   :  { %591 = vst.msk [vmem:[#allocation2 + $0x4] sm:$0xf] %vm589_vm0, %v3564_v57  ;;  %v370_v61 = vadd.f32 %v3619_v58, %v4356_v44  ;;  %v3622_v62 = vadd.f32 %v3621_v60, %v3620_v59 }
 0x103   :  { %v465_v63 = vmax.f32 %v370_v61, 0.0  ;;  %v373_v0 = vadd.f32 %v3622_v62, %v4356_v44 }
 0x105   :  { %v3565_v1 = vpack.c.bf16 %v465_v63, %v465_v63  ;;  %v466_v2 = vmax.f32 %v373_v0, 0.0  ;;  %v3623_v3 = vpop.f32.mrb[8].mxu0 }
 0x106   :  { %v3624_v4 = vpop.f32.mrb[9].mxu0  ;;  %v626_v5 = vld [vmem:[#allocation2] sm:$0xe] }
 0x107   :  { %v615_v6 = vld [vmem:[#allocation2] sm:$0xf]  ;;  %592 = vst.msk [vmem:[#allocation2 + $0x8] sm:$0xf] %vm589_vm0, %v3565_v1  ;;  %v3566_v7 = vpack.c.bf16 %v466_v2, %v466_v2  ;;  %v3625_v8 = vadd.f32 %v3624_v4, %v3623_v3  ;;  %v3626_v9 = vpop.f32.mrb[10].mxu0  ;;  %v3348_v15 = vrot.slane %v626_v5, 9 }
 0x108   :  { %620 = vst.msk [vmem:[#allocation3] sm:$0xf] %vm589_vm0, %v615_v6  ;;  %v3627_v10 = vpop.f32.mrb[11].mxu0  ;;  %v627_v11 = vld [vmem:[#allocation2 + $0x4] sm:$0xf] }
 0x109   :  { %593 = vst.msk [vmem:[#allocation2 + $0xc] sm:$0xf] %vm589_vm0, %v3566_v7  ;;  %v378_v13 = vadd.f32 %v3625_v8, %v4356_v44  ;;  %v3628_v14 = vadd.f32 %v3627_v10, %v3626_v9  ;;  %v641_v16 = vrot.slane %v627_v11, 5  ;;  %v616_v17 = vld [vmem:[#allocation2 + $0x4] sm:$0xf] }
 0x10a   :  { %621 = vst.msk [vmem:[#allocation3 + $0x10] sm:$0xf] %vm589_vm0, %v616_v17  ;;  %v675_v36 = vld [vmem:[#allocation2 + $0x4] sm:$0xe] }
 0x10b   :  { %v467_v18 = vmax.f32 %v378_v13, 0.0  ;;  %v381_v19 = vadd.f32 %v3628_v14, %v4356_v44  ;;  %v642_v20 = vsel %vm4366_vm3, %v3348_v15, %v641_v16  ;;  %v643_v26 = vrot.slane %v641_v16, 4  ;;  %v721_v54 = vld [vmem:[#allocation2 + $0x4] sm:$0xc] }
 0x10c   :  { %653 = vrot.lane.b32.xlu0 %v642_v20, %s4163_s0  ;;  %v3349_v49 = vrot.slane %v675_v36, 9  ;;  %v3350_v3 = vrot.slane %v721_v54, 10  ;;  %v3923_v15 = vld [vmem:[%s5420_s3 + $0x40] sm:$0xff]   ;;  %v3928_v54 = vld [vmem:[%s5420_s3 + $0x10] sm:$0xff]  }
 0x10d   :  { %v3567_v21 = vpack.c.bf16 %v467_v18, %v467_v18  ;;  %v468_v22 = vmax.f32 %v381_v19, 0.0  ;;  %v3629_v23 = vpop.f32.mrb[12].mxu0  ;;  %v3924_v16 = vld [vmem:[%s5420_s3] sm:$0xff]   ;;  %3689 = vmatprep.subr.bf16.mxu1 %v3923_v15 }
 0x10e   :  { %v3630_v24 = vpop.f32.mrb[13].mxu0  ;;  %v4377_v25 = vld [vmem:[#allocation2 + $0x8] sm:$0xf]  ;;  %3690 = vmatpush3.bf16.msra.mxu1 %v3924_v16 }
 0x10f   :  { %v676_v27 = vld [vmem:[#allocation2 + $0x8] sm:$0xf]  ;;  %594 = vst.msk [vmem:[#allocation2 + $0x10] sm:$0xf] %vm589_vm0, %v3567_v21  ;;  %v3568_v28 = vpack.c.bf16 %v468_v22, %v468_v22  ;;  %v3631_v29 = vadd.f32 %v3630_v24, %v3629_v23  ;;  %v3632_v30 = vpop.f32.mrb[14].mxu0  ;;  %v644_v31 = vrot.slane %v4377_v25, 5 }
 0x110   :  { %v687_v32 = vrot.slane %v676_v27, 5  ;;  %v722_v33 = vld [vmem:[#allocation2 + $0x8] sm:$0xf]  ;;  %v3633_v34 = vpop.f32.mrb[15].mxu0  ;;  %v4381_v35 = vld [vmem:[#allocation2 + $0xc] sm:$0xf] }
 0x111   :  { %v738_v37 = vrot.slane %v722_v33, 6  ;;  %595 = vst.msk [vmem:[#allocation2 + $0x14] sm:$0xf] %vm589_vm0, %v3568_v28  ;;  %v386_v38 = vadd.f32 %v3631_v29, %v4356_v44  ;;  %v3634_v39 = vadd.f32 %v3633_v34, %v3632_v30  ;;  %v645_v40 = vsel %vm4366_vm3, %v643_v26, %v644_v31  ;;  %v4387_v42 = vld [vmem:[#allocation2 + $0xc] sm:$0xf] }
 0x112   :  { %v689_v41 = vrot.slane %v687_v32, 4  ;;  %v618_v43 = vld [vmem:[#allocation2 + $0xc] sm:$0xf]  ;;  %655 = vrot.lane.b32.xlu0 %v645_v40, %s4163_s0  ;;  %v690_v45 = vrot.slane %v4381_v35, 5  ;;  %v617_v46 = vld [vmem:[#allocation2 + $0x8] sm:$0xf]  ;;  %v688_v58 = vsel %vm4366_vm3, %v3349_v49, %v687_v32 }
 0x113   :  { %623 = vst.msk [vmem:[#allocation3 + $0x30] sm:$0xf] %vm589_vm0, %v618_v43  ;;  %v469_v47 = vmax.f32 %v386_v38, 0.0  ;;  %v389_v48 = vadd.f32 %v3634_v39, %v4356_v44  ;;  %v629_v50 = vld [vmem:[#allocation2 + $0xc] sm:$0xf]  ;;  %v740_v52 = vrot.slane %v738_v37, 4  ;;  %v739_v13 = vsel %vm4405_vm7, %v3350_v3, %v738_v37 }
 0x114   :  { %622 = vst.msk [vmem:[#allocation3 + $0x20] sm:$0xf] %vm589_vm0, %v617_v46  ;;  %v691_v51 = vsel %vm4366_vm3, %v689_v41, %v690_v45  ;;  %v741_v53 = vrot.slane %v4387_v42, 6  ;;  %v647_v62 = vrot.slane %v629_v50, 5  ;;  %v646_v14 = vrot.slane %v644_v31, 4  ;;  %v3925_v25 = vld [vmem:[%s5420_s3 + $0x48] sm:$0xff]  }
 0x115   :  { %v3569_v55 = vpack.c.bf16 %v469_v47, %v469_v47  ;;  %v470_v56 = vmax.f32 %v389_v48, 0.0  ;;  %701 = vrot.lane.b32.xlu1 %v691_v51, %s4164_s2  ;;  %v3635_v57 = vpop.f32.mrb[16].mxu0  ;;  %v3926_v31 = vld [vmem:[%s5420_s3 + $0x8] sm:$0xff]   ;;  %3691 = vmatprep.subr.bf16.mxu1 %v3925_v25  ;;  %v692_v37 = vrot.slane %v690_v45, 4  ;;  %v3927_v51 = vld [vmem:[%s5420_s3 + $0x50] sm:$0xff]   ;;  %v3930_v3 = vld [vmem:[%s5420_s3 + $0x18] sm:$0xff]  }
 0x116   :  { %v3636_v59 = vpop.f32.mrb[17].mxu0  ;;  %699 = vrot.lane.b32.xlu0 %v688_v58, %s4164_s2  ;;  %v4409_v61 = vld [vmem:[#allocation2 + $0x10] sm:$0xf]  ;;  %v742_v6 = vsel %vm4405_vm7, %v740_v52, %v741_v53  ;;  %v649_v18 = vrot.slane %v647_v62, 4  ;;  %v648_v29 = vsel %vm4366_vm3, %v646_v14, %v647_v62  ;;  %3692 = vmatpush3.bf16.msra.mxu1 %v3926_v31 }
 0x117   :  { %v678_v63 = vld [vmem:[#allocation2 + $0x10] sm:$0xf]  ;;  %596 = vst.msk [vmem:[#allocation2 + $0x18] sm:$0xf] %vm589_vm0, %v3569_v55  ;;  %v3570_v0 = vpack.c.bf16 %v470_v56, %v470_v56  ;;  %v3637_v1 = vadd.f32 %v3636_v59, %v3635_v57  ;;  %v3638_v2 = vpop.f32.mrb[18].mxu0  ;;  %v650_v4 = vrot.slane %v4409_v61, 5  ;;  %3693 = vmatprep.subr.bf16.mxu1 %v3927_v51 }
 0x118   :  { %v3639_v5 = vpop.f32.mrb[19].mxu0  ;;  %v4417_v7 = vld [vmem:[#allocation2 + $0x14] sm:$0xf]  ;;  %v693_v8 = vrot.slane %v678_v63, 5  ;;  %v4419_v9 = vld [vmem:[#allocation2 + $0x10] sm:$0xf] }
 0x119   :  { %597 = vst.msk [vmem:[#allocation2 + $0x1c] sm:$0xf] %vm589_vm0, %v3570_v0  ;;  %v394_v10 = vadd.f32 %v3637_v1, %v4356_v44  ;;  %v3640_v11 = vadd.f32 %v3639_v5, %v3638_v2  ;;  %754 = vrot.lane.b32.xlu1 %v742_v6, %s4165_s22  ;;  %v619_v17 = vld [vmem:[#allocation2 + $0x10] sm:$0x7]  ;;  %v651_v21 = vsel %vm4366_vm3, %v649_v18, %v650_v4  ;;  %v696_v23 = vrot.slane %v4417_v7, 5  ;;  %v3929_v0 = vld [vmem:[%s5420_s3 + $0x58] sm:$0xff]  }
 0x11a   :  { %752 = vrot.lane.b32.xlu0 %v739_v13, %s4165_s22  ;;  %625 = vst.msk [vmem:[#allocation3 + $0x40] sm:$0x7] %vm624_vm6, %v619_v17  ;;  %v695_v22 = vrot.slane %v693_v8, 4  ;;  %v744_v24 = vrot.slane %v4419_v9, 6  ;;  %v4447_v30 = vld [vmem:[#allocation2 + $0x14] sm:$0xf]  ;;  %v694_v35 = vsel %vm4366_vm3, %v692_v37, %v693_v8  ;;  %3694 = vmatpush3.bf16.msra.mxu1 %v3928_v54 }
 0x11b   :  { %v471_v19 = vmax.f32 %v394_v10, 0.0  ;;  %v397_v20 = vadd.f32 %v3640_v11, %v4356_v44  ;;  %v747_v43 = vrot.slane %v4447_v30, 6  ;;  %v743_v57 = vrot.slane %v741_v53, 4  ;;  %3695 = vmatprep.subr.bf16.mxu1 %v3929_v0  ;;  %v3931_v61 = vld [vmem:[%s5420_s3 + $0x60] sm:$0xff]   ;;  %v3933_v7 = vld [vmem:[%s5420_s3 + $0x68] sm:$0xff]   ;;  %v3936_v0 = vld [vmem:[%s5420_s3 + $0x30] sm:$0xff]  }
 0x11c   :  { %v697_v39 = vsel %vm4366_vm3, %v695_v22, %v696_v23  ;;  %v746_v41 = vrot.slane %v744_v24, 4  ;;  %v652_v14 = vrot.slane %v650_v4, 4 }
 0x11d   :  { %v3571_v26 = vpack.c.bf16 %v471_v19, %v471_v19  ;;  %v472_v27 = vmax.f32 %v397_v20, 0.0  ;;  %659 = vrot.lane.b32.xlu1 %v651_v21, %s4163_s0  ;;  %v3641_v28 = vpop.f32.mrb[20].mxu0  ;;  %v745_v2 = vsel %vm4405_vm7, %v743_v57, %v744_v24  ;;  %v3932_v24 = vld [vmem:[%s5420_s3 + $0x20] sm:$0xff]  }
 0x11e   :  { %v3642_v32 = vpop.f32.mrb[21].mxu0  ;;  %657 = vrot.lane.b32.xlu0 %v648_v29, %s4163_s0  ;;  %v774_v38 = vld [vmem:[#allocation2 + $0x18] sm:$0xe]  ;;  %v748_v58 = vsel %vm4405_vm7, %v746_v41, %v747_v43  ;;  %3696 = vmatpush3.bf16.msra.mxu1 %v3930_v3  ;;  %v726_v22 = vld [vmem:[#allocation2 + $0x18] sm:$0x1] }
 0x11f   :  { %598 = vst.msk [vmem:[#allocation2 + $0x20] sm:$0xf] %vm589_vm0, %v3571_v26  ;;  %v3572_v33 = vpack.c.bf16 %v472_v27, %v472_v27  ;;  %v3643_v34 = vadd.f32 %v3642_v32, %v3641_v28  ;;  %v3644_v36 = vpop.f32.mrb[22].mxu0  ;;  %v808_v46 = vld [vmem:[#allocation2 + $0x18] sm:$0xc]  ;;  %v3351_v47 = vrot.slane %v774_v38, 9  ;;  %3697 = vmatprep.subr.bf16.mxu1 %v3931_v61 }
 0x120   :  { %v3645_v40 = vpop.f32.mrb[23].mxu0  ;;  %v809_v49 = vld [vmem:[#allocation2 + $0x1c] sm:$0xf]  ;;  %v3352_v59 = vrot.slane %v808_v46, 10  ;;  %v698_v26 = vrot.slane %v696_v23, 4  ;;  %v750_v37 = vrot.slane %v726_v22, 6 }
 0x121   :  { %599 = vst.msk [vmem:[#allocation2 + $0x24] sm:$0xf] %vm589_vm0, %v3572_v33  ;;  %v402_v48 = vadd.f32 %v3643_v34, %v4356_v44  ;;  %705 = vrot.lane.b32.xlu1 %v697_v39, %s4164_s2  ;;  %v3646_v45 = vadd.f32 %v3645_v40, %v3644_v36  ;;  %v4466_v50 = vld [vmem:[#allocation2 + $0x1c] sm:$0xf]  ;;  %v822_v62 = vrot.slane %v809_v49, 6  ;;  %v3934_v39 = vld [vmem:[%s5420_s3 + $0x28] sm:$0xff]  }
 0x122   :  { %703 = vrot.lane.b32.xlu0 %v694_v35, %s4164_s2  ;;  %v786_v52 = vrot.slane %v4466_v50, 5  ;;  %3698 = vmatpush3.bf16.msra.mxu1 %v3932_v24  ;;  %v749_v35 = vrot.slane %v747_v43, 4  ;;  %v856_v54 = vld [vmem:[#allocation2 + $0x1c] sm:$0xc] }
 0x123   :  { %v473_v55 = vmax.f32 %v402_v48, 0.0  ;;  %v405_v56 = vadd.f32 %v3646_v45, %v4356_v44  ;;  %v823_v13 = vsel %vm4405_vm7, %v3352_v59, %v822_v62  ;;  %v824_v4 = vrot.slane %v822_v62, 4  ;;  %3699 = vmatprep.subr.bf16.mxu1 %v3933_v7  ;;  %v3935_v59 = vld [vmem:[%s5420_s3 + $0x70] sm:$0xff]   ;;  %v904_v3 = vld [vmem:[#allocation2 + $0x1c] sm:$0x8] }
 0x124   :  { %v787_v63 = vsel %vm4366_vm3, %v3351_v47, %v786_v52  ;;  %v788_v41 = vrot.slane %v786_v52, 4  ;;  %v3938_v22 = vld [vmem:[%s5420_s3 + $0x38] sm:$0xff]  }
 0x125   :  { %v3573_v42 = vpack.c.bf16 %v473_v55, %v473_v55  ;;  %v474_v53 = vmax.f32 %v405_v56, 0.0  ;;  %758 = vrot.lane.b32.xlu1 %v748_v58, %s4165_s22  ;;  %v3647_v1 = vpop.f32.mrb[24].mxu0  ;;  %803 = vst.msk [vmem:[#allocation3 + $0x4] sm:$0xf] %vm589_vm0, %v787_v63  ;;  %v751_v56 = vsel %vm4405_vm7, %v749_v35, %v750_v37 }
 0x126   :  { %v3648_v5 = vpop.f32.mrb[25].mxu0  ;;  %756 = vrot.lane.b32.xlu0 %v745_v2, %s4165_s22  ;;  %v4498_v6 = vld [vmem:[#allocation2 + $0x20] sm:$0xf]  ;;  %3700 = vmatpush3.bf16.msra.mxu1 %v3934_v39 }
 0x127   :  { %v4500_v8 = vld [vmem:[#allocation2 + $0x20] sm:$0xf]  ;;  %600 = vst.msk [vmem:[#allocation2 + $0x28] sm:$0xf] %vm589_vm0, %v3573_v42  ;;  %v3574_v9 = vpack.c.bf16 %v474_v53, %v474_v53  ;;  %v3649_v10 = vadd.f32 %v3648_v5, %v3647_v1  ;;  %v3650_v11 = vpop.f32.mrb[26].mxu0  ;;  %v825_v15 = vrot.slane %v4498_v6, 6  ;;  %3701 = vmatprep.subr.bf16.mxu1 %v3935_v59 }
 0x128   :  { %v3651_v16 = vpop.f32.mrb[27].mxu0  ;;  %v870_v17 = vrot.slane %v4500_v8, 6  ;;  %v4512_v20 = vld [vmem:[#allocation2 + $0x24] sm:$0xf]  ;;  %v4514_v21 = vld [vmem:[#allocation2 + $0x20] sm:$0xf] }
 0x129   :  { %601 = vst.msk [vmem:[#allocation2 + $0x2c] sm:$0xf] %vm589_vm0, %v3574_v9  ;;  %v410_v18 = vadd.f32 %v3649_v10, %v4356_v44  ;;  %836 = vrot.lane.b32.xlu1 %v823_v13, %s4163_s0  ;;  %v3652_v19 = vadd.f32 %v3651_v16, %v3650_v11  ;;  %v4526_v28 = vld [vmem:[#allocation2 + $0x20] sm:$0xf]  ;;  %v826_v29 = vsel %vm4405_vm7, %v824_v4, %v825_v15  ;;  %v873_v32 = vrot.slane %v4512_v20, 6  ;;  %v3937_v13 = vld [vmem:[%s5420_s3 + $0x78] sm:$0xff]  }
 0x12a   :  { %661 = vrot.lane.b32.xlu0 %v652_v14, %s4163_s0  ;;  %v872_v31 = vrot.slane %v870_v17, 4  ;;  %v921_v33 = vrot.slane %v4514_v21, 7  ;;  %v4540_v38 = vld [vmem:[#allocation2 + $0x24] sm:$0xf]  ;;  %v789_v46 = vrot.slane %v4526_v28, 5  ;;  %v3353_v1 = vrot.slane %v856_v54, 10  ;;  %3702 = vmatpush3.bf16.msra.mxu1 %v3936_v0 }
 0x12b   :  { %v475_v25 = vmax.f32 %v410_v18, 0.0  ;;  %v413_v27 = vadd.f32 %v3652_v19, %v4356_v44  ;;  %v4552_v45 = vld [vmem:[#allocation2 + $0x24] sm:$0xf]  ;;  %v924_v52 = vrot.slane %v4540_v38, 7  ;;  %3703 = vmatprep.subr.bf16.mxu1 %v3937_v13 }
 0x12c   :  { %v874_v50 = vsel %vm4405_vm7, %v872_v31, %v873_v32  ;;  %v923_v51 = vrot.slane %v921_v33, 4  ;;  %v790_v30 = vsel %vm4366_vm3, %v788_v41, %v789_v46  ;;  %v828_v62 = vrot.slane %v4552_v45, 6  ;;  %v4590_v5 = vld [vmem:[#allocation2 + $0x24] sm:$0xf] }
 0x12d   :  { %v3575_v23 = vpack.c.bf16 %v475_v25, %v475_v25  ;;  %838 = vrot.lane.b32.xlu1 %v826_v29, %s4163_s0  ;;  %v476_v34 = vmax.f32 %v413_v27, 0.0  ;;  %v3653_v36 = vpop.f32.mrb[28].mxu0  ;;  %804 = vst.msk [vmem:[#allocation3 + $0x14] sm:$0xf] %vm589_vm0, %v790_v30  ;;  %v871_v16 = vsel %vm4405_vm7, %v3353_v1, %v870_v17  ;;  %v3354_v25 = vrot.slane %v904_v3, 11 }
 0x12e   :  { %707 = vrot.lane.b32.xlu0 %v698_v26, %s4164_s2  ;;  %v3654_v40 = vpop.f32.mrb[29].mxu0  ;;  %v4570_v57 = vld [vmem:[#allocation2 + $0x28] sm:$0xf]  ;;  %v925_v9 = vsel %vm4585_vm10, %v923_v51, %v924_v52  ;;  %v830_v24 = vrot.slane %v828_v62, 4  ;;  %v792_v26 = vrot.slane %v4590_v5, 5  ;;  %3704 = vmatpush3.bf16.msra.mxu1 %v3938_v22  ;;  %v926_v20 = vrot.slane %v924_v52, 4 }
 0x12f   :  { %602 = vst.msk [vmem:[#allocation2 + $0x30] sm:$0xf] %vm589_vm0, %v3575_v23  ;;  %v3576_v47 = vpack.c.bf16 %v476_v34, %v476_v34  ;;  %v3655_v48 = vadd.f32 %v3654_v40, %v3653_v36  ;;  %v3656_v49 = vpop.f32.mrb[30].mxu0  ;;  %v4578_v63 = vld [vmem:[#allocation2 + $0x28] sm:$0xf]  ;;  %v831_v10 = vrot.slane %v4570_v57, 6  ;;  %v922_v40 = vsel %vm4585_vm10, %v3354_v25, %v921_v33 }
 0x130   :  { %v3657_v55 = vpop.f32.mrb[31].mxu0  ;;  %v4597_v11 = vld [vmem:[#allocation2 + $0x2c] sm:$0xf]  ;;  %v876_v61 = vrot.slane %v4578_v63, 6  ;;  %v4608_v4 = vld [vmem:[#allocation2 + $0x28] sm:$0xf] }
 0x131   :  { %603 = vst.msk [vmem:[#allocation2 + $0x34] sm:$0xf] %vm589_vm0, %v3576_v47  ;;  %886 = vrot.lane.b32.xlu1 %v874_v50, %s4164_s2  ;;  %v418_v43 = vadd.f32 %v3655_v48, %v4356_v44  ;;  %v3658_v58 = vadd.f32 %v3657_v55, %v3656_v49  ;;  %v879_v31 = vrot.slane %v4597_v11, 6  ;;  %v778_v23 = vld [vmem:[#allocation2 + $0x28] sm:$0xf]  ;;  %v832_v34 = vsel %vm4405_vm7, %v830_v24, %v831_v10 }
 0x132   :  { %760 = vrot.lane.b32.xlu0 %v751_v56, %s4165_s22  ;;  %v878_v29 = vrot.slane %v876_v61, 4  ;;  %v4625_v36 = vld [vmem:[#allocation2 + $0x2c] sm:$0xf]  ;;  %v927_v37 = vrot.slane %v4608_v4, 7  ;;  %v827_v47 = vrot.slane %v825_v15, 4  ;;  %v794_v50 = vrot.slane %v792_v26, 4 }
 0x133   :  { %v477_v42 = vmax.f32 %v418_v43, 0.0  ;;  %v421_v2 = vadd.f32 %v3658_v58, %v4356_v44  ;;  %v795_v51 = vrot.slane %v778_v23, 5  ;;  %v930_v33 = vrot.slane %v4625_v36, 7  ;;  %v813_v1 = vld [vmem:[#allocation2 + $0x2c] sm:$0x1] }
 0x134   :  { %v929_v49 = vrot.slane %v927_v37, 4  ;;  %v880_v21 = vsel %vm4405_vm7, %v878_v29, %v879_v31  ;;  %v791_v15 = vrot.slane %v789_v46, 4  ;;  %v829_v59 = vsel %vm4405_vm7, %v827_v47, %v828_v62 }
 0x135   :  { %v3577_v14 = vpack.c.bf16 %v477_v42, %v477_v42  ;;  %937 = vrot.lane.b32.xlu1 %v925_v9, %s4165_s22  ;;  %v478_v18 = vmax.f32 %v421_v2, 0.0  ;;  %v3659_v19 = vpop.f32.mrb[32].mxu0  ;;  %v796_v6 = vsel %vm4366_vm3, %v794_v50, %v795_v51  ;;  %v797_v43 = vrot.slane %v795_v51, 4 }
 0x136   :  { %884 = vrot.lane.b32.xlu0 %v871_v16, %s4164_s2  ;;  %v3660_v8 = vpop.f32.mrb[33].mxu0  ;;  %v955_v35 = vld [vmem:[#allocation2 + $0x30] sm:$0xc]  ;;  %806 = vst.msk [vmem:[#allocation3 + $0x34] sm:$0xf] %vm589_vm0, %v796_v6  ;;  %v793_v46 = vsel %vm4366_vm3, %v791_v15, %v792_v26  ;;  %v875_v62 = vrot.slane %v873_v32, 4  ;;  %v931_v13 = vsel %vm4585_vm10, %v929_v49, %v930_v33  ;;  %v928_v38 = vsel %vm4585_vm10, %v926_v20, %v927_v37 }
 0x137   :  { %604 = vst.msk [vmem:[#allocation2 + $0x38] sm:$0xf] %vm589_vm0, %v3577_v14  ;;  %v3578_v17 = vpack.c.bf16 %v478_v18, %v478_v18  ;;  %v3661_v27 = vadd.f32 %v3660_v8, %v3659_v19  ;;  %v3662_v7 = vpop.f32.mrb[34].mxu0  ;;  %v3355_v56 = vrot.slane %v955_v35, 10  ;;  %805 = vst.msk [vmem:[#allocation3 + $0x24] sm:$0xf] %vm589_vm0, %v793_v46 }
 0x138   :  { %v3663_v39 = vpop.f32.mrb[35].mxu0  ;;  %v956_v54 = vld [vmem:[#allocation2 + $0x34] sm:$0xf]  ;;  %807 = vst.msk [vmem:[#allocation3 + $0x44] sm:$0x7] %vm624_vm6, %v797_v43  ;;  %v833_v14 = vrot.slane %v831_v10, 4  ;;  %v877_v18 = vsel %vm4405_vm7, %v875_v62, %v876_v61 }
 0x139   :  { %842 = vrot.lane.b32.xlu1 %v832_v34, %s4163_s0  ;;  %605 = vst.msk [vmem:[#allocation2 + $0x3c] sm:$0xf] %vm589_vm0, %v3578_v17  ;;  %v426_v41 = vadd.f32 %v3661_v27, %v4356_v44  ;;  %v3664_v48 = vadd.f32 %v3663_v39, %v3662_v7  ;;  %v969_v2 = vrot.slane %v956_v54, 6  ;;  %v834_v16 = vrot.slane %v813_v1, 6  ;;  %v861_v57 = vld [vmem:[#allocation2 + $0x30] sm:$0x1] }
 0x13a   :  { %935 = vrot.lane.b32.xlu0 %v922_v40, %s4165_s22  ;;  %v993_v4 = vld [vmem:[#allocation2 + $0x30] sm:$0x8]  ;;  %v994_v52 = vld [vmem:[#allocation2 + $0x34] sm:$0xf]  ;;  %v881_v63 = vrot.slane %v879_v31, 4  ;;  %v882_v17 = vrot.slane %v861_v57, 6 }
 0x13b   :  { %v479_v55 = vmax.f32 %v426_v41, 0.0  ;;  %v429_v30 = vadd.f32 %v3664_v48, %v4356_v44  ;;  %v970_v9 = vsel %vm4405_vm7, %v3355_v56, %v969_v2  ;;  %v971_v61 = vrot.slane %v969_v2, 4  ;;  %v909_v29 = vld [vmem:[#allocation2 + $0x30] sm:$0x3] }
 0x13c   :  { %988 = vst.msk [vmem:[#allocation3 + $0x8] sm:$0xf] %vm589_vm0, %v970_v9  ;;  %v835_v26 = vsel %vm4405_vm7, %v833_v14, %v834_v16  ;;  %v3356_v27 = vrot.slane %v993_v4, 11  ;;  %v1007_v37 = vrot.slane %v994_v52, 7  ;;  %v932_v35 = vrot.slane %v930_v33, 4 }
 0x13d   :  { %v3579_v58 = vpack.c.bf16 %v479_v55, %v479_v55  ;;  %890 = vrot.lane.b32.xlu1 %v880_v21, %s4164_s2  ;;  %v480_v0 = vmax.f32 %v429_v30, 0.0  ;;  %v3665_v42 = vpop.f32.mrb[36].mxu0  ;;  %v933_v49 = vrot.slane %v909_v29, 7  ;;  %v883_v51 = vsel %vm4405_vm7, %v881_v63, %v882_v17  ;;  %v1041_v55 = vld [vmem:[#allocation2 + $0x34] sm:$0x8]  ;;  %v3945_v29 = vld [vmem:[%s5420_s3 + $0xc0] sm:$0xff]  }
 0x13e   :  { %840 = vrot.lane.b32.xlu0 %v829_v59, %s4163_s0  ;;  %v3666_v28 = vpop.f32.mrb[37].mxu0  ;;  %v957_v22 = vld [vmem:[#allocation2 + $0x38] sm:$0xf]  ;;  %v1008_v36 = vsel %vm4585_vm10, %v3356_v27, %v1007_v37  ;;  %v1009_v14 = vrot.slane %v1007_v37, 4  ;;  %3723 = vmatprep.subr.bf16.mxu1 %v3945_v29 }
 0x13f   :  { %606 = vst.msk [vmem:[#allocation2 + $0x40] sm:$0xf] %vm589_vm0, %v3579_v58  ;;  %v3580_v45 = vpack.c.bf16 %v480_v0, %v480_v0  ;;  %v3667_v3 = vadd.f32 %v3666_v28, %v3665_v42  ;;  %v3668_v5 = vpop.f32.mrb[38].mxu0  ;;  %v972_v7 = vrot.slane %v957_v22, 6  ;;  %v1042_v6 = vld [vmem:[#allocation2 + $0x38] sm:$0xf]  ;;  %v934_v58 = vsel %vm4585_vm10, %v932_v35, %v933_v49 }
 0x140   :  { %v3669_v32 = vpop.f32.mrb[39].mxu0  ;;  %v958_v24 = vld [vmem:[#allocation2 + $0x3c] sm:$0xf]  ;;  %v3357_v42 = vrot.slane %v1041_v55, 11  ;;  %v1055_v1 = vrot.slane %v1042_v6, 7 }
 0x141   :  { %941 = vrot.lane.b32.xlu1 %v931_v13, %s4165_s22  ;;  %607 = vst.msk [vmem:[#allocation2 + $0x44] sm:$0xf] %vm589_vm0, %v3580_v45  ;;  %v434_v19 = vadd.f32 %v3667_v3, %v4356_v44  ;;  %v3670_v10 = vadd.f32 %v3669_v32, %v3668_v5  ;;  %v975_v40 = vrot.slane %v958_v24, 6  ;;  %v973_v31 = vsel %vm4405_vm7, %v971_v61, %v972_v7  ;;  %v995_v2 = vld [vmem:[#allocation2 + $0x38] sm:$0xf] }
 0x142   :  { %888 = vrot.lane.b32.xlu0 %v877_v18, %s4164_s2  ;;  %v974_v41 = vrot.slane %v972_v7, 4  ;;  %989 = vst.msk [vmem:[#allocation3 + $0x18] sm:$0xf] %vm589_vm0, %v973_v31  ;;  %v1089_v62 = vld [vmem:[#allocation2 + $0x38] sm:$0xf]  ;;  %v1010_v57 = vrot.slane %v995_v2, 7  ;;  %v1056_v22 = vsel %vm4585_vm10, %v3357_v42, %v1055_v1 }
 0x143   :  { %v481_v25 = vmax.f32 %v434_v19, 0.0  ;;  %v437_v8 = vadd.f32 %v3670_v10, %v4356_v44  ;;  %v977_v0 = vrot.slane %v975_v40, 4  ;;  %v996_v9 = vld [vmem:[#allocation2 + $0x3c] sm:$0xf] }
 0x144   :  { %v976_v21 = vsel %vm4405_vm7, %v974_v41, %v975_v40  ;;  %v1090_v32 = vld [vmem:[#allocation2 + $0x3c] sm:$0xf]  ;;  %v1012_v61 = vrot.slane %v1010_v57, 4  ;;  %v1011_v37 = vsel %vm4585_vm10, %v1009_v14, %v1010_v57 }
 0x145   :  { %v3581_v23 = vpack.c.bf16 %v481_v25, %v481_v25  ;;  %844 = vrot.lane.b32.xlu1 %v835_v26, %s4163_s0  ;;  %v482_v34 = vmax.f32 %v437_v8, 0.0  ;;  %v3671_v39 = vpop.f32.mrb[40].mxu0  ;;  %990 = vst.msk [vmem:[#allocation3 + $0x28] sm:$0xf] %vm589_vm0, %v976_v21  ;;  %v1043_v26 = vld [vmem:[#allocation2 + $0x3c] sm:$0xf] }
 0x146   :  { %939 = vrot.lane.b32.xlu0 %v928_v38, %s4165_s22  ;;  %v3672_v11 = vpop.f32.mrb[41].mxu0  ;;  %v959_v15 = vld [vmem:[#allocation2 + $0x40] sm:$0xf]  ;;  %v1013_v38 = vrot.slane %v996_v9, 7  ;;  %v1058_v40 = vrot.slane %v1043_v26, 7 }
 0x147   :  { %608 = vst.msk [vmem:[#allocation2 + $0x48] sm:$0xf] %vm589_vm0, %v3581_v23  ;;  %v3582_v47 = vpack.c.bf16 %v482_v34, %v482_v34  ;;  %v3673_v48 = vadd.f32 %v3672_v11, %v3671_v39  ;;  %v3674_v50 = vpop.f32.mrb[42].mxu0  ;;  %v978_v28 = vrot.slane %v959_v15, 6  ;;  %v1057_v39 = vrot.slane %v1055_v1, 4 }
 0x148   :  { %v3675_v54 = vpop.f32.mrb[43].mxu0  ;;  %v960_v43 = vld [vmem:[#allocation2 + $0x44] sm:$0x1]  ;;  %v1014_v31 = vsel %vm4585_vm10, %v1012_v61, %v1013_v38  ;;  %v1044_v49 = vld [vmem:[#allocation2 + $0x40] sm:$0xf]  ;;  %v1060_v6 = vrot.slane %v1058_v40, 4 }
 0x149   :  { %892 = vrot.lane.b32.xlu1 %v883_v51, %s4164_s2  ;;  %609 = vst.msk [vmem:[#allocation2 + $0x4c] sm:$0xf] %vm589_vm0, %v3582_v47  ;;  %v442_v33 = vadd.f32 %v3673_v48, %v4356_v44  ;;  %v3676_v30 = vadd.f32 %v3675_v54, %v3674_v50  ;;  %v981_v46 = vrot.slane %v960_v43, 6  ;;  %v979_v16 = vsel %vm4405_vm7, %v977_v0, %v978_v28  ;;  %v4737_v48 = vld [vmem:[#allocation2 + $0x40] sm:$0xf] }
 0x14a   :  { %1021 = vrot.lane.b32.xlu0 %v1008_v36, %s4163_s0  ;;  %v980_v20 = vrot.slane %v978_v28, 4  ;;  %991 = vst.msk [vmem:[#allocation3 + $0x38] sm:$0xf] %vm589_vm0, %v979_v16  ;;  %v1059_v36 = vsel %vm4585_vm10, %v1057_v39, %v1058_v40  ;;  %v1091_v43 = vld [vmem:[#allocation2 + $0x40] sm:$0xf] }
 0x14b   :  { %v483_v56 = vmax.f32 %v442_v33, 0.0  ;;  %v445_v59 = vadd.f32 %v3676_v30, %v4356_v44  ;;  %v1015_v33 = vrot.slane %v1013_v38, 4  ;;  %v1016_v30 = vrot.slane %v4737_v48, 7 }
 0x14c   :  { %v982_v63 = vsel %vm4405_vm7, %v980_v20, %v981_v46 }
 0x14d   :  { %v3583_v45 = vpack.c.bf16 %v483_v56, %v483_v56  ;;  %943 = vrot.lane.b32.xlu1 %v934_v58, %s4165_s22  ;;  %v484_v3 = vmax.f32 %v445_v59, 0.0  ;;  %v3677_v5 = vpop.f32.mrb[44].mxu0  ;;  %992 = vst.msk [vmem:[#allocation3 + $0x48] sm:$0x7] %vm624_vm6, %v982_v63  ;;  %v1061_v58 = vrot.slane %v1044_v49, 7 }
 0x14e   :  { %1099 = vrot.lane.b32.xlu0 %v1089_v62, %s4165_s22  ;;  %v3678_v13 = vpop.f32.mrb[45].mxu0  ;;  %v1119_v4 = vld [vmem:[#allocation2 + $0x48] sm:$0x8]  ;;  %v4747_v59 = vld [vmem:[#allocation2 + $0x44] sm:$0xf] }
 0x14f   :  { %610 = vst.msk [vmem:[#allocation2 + $0x50] sm:$0xf] %vm589_vm0, %v3583_v45  ;;  %v3584_v18 = vpack.c.bf16 %v484_v3, %v484_v3  ;;  %v3679_v19 = vadd.f32 %v3678_v13, %v3677_v5  ;;  %v3680_v10 = vpop.f32.mrb[46].mxu0  ;;  %v3358_v25 = vrot.slane %v1119_v4, 11  ;;  %v1017_v45 = vsel %vm4585_vm10, %v1015_v33, %v1016_v30 }
 0x150   :  { %v3681_v52 = vpop.f32.mrb[47].mxu0  ;;  %v1120_v24 = vld [vmem:[#allocation2 + $0x4c] sm:$0xf]  ;;  %v1063_v62 = vrot.slane %v1061_v58, 4  ;;  %v1062_v5 = vsel %vm4585_vm10, %v1060_v6, %v1061_v58 }
 0x151   :  { %1101 = vrot.lane.b32.xlu1 %v1090_v32, %s4165_s22  ;;  %611 = vst.msk [vmem:[#allocation2 + $0x54] sm:$0xf] %vm589_vm0, %v3584_v18  ;;  %v450_v8 = vadd.f32 %v3679_v19, %v4356_v44  ;;  %v3682_v17 = vadd.f32 %v3681_v52, %v3680_v10  ;;  %v1133_v27 = vrot.slane %v1120_v24, 7  ;;  %v1157_v20 = vld [vmem:[#allocation2 + $0x4c] sm:$0xf] }
 0x152   :  { %1069 = vrot.lane.b32.xlu0 %v1056_v22, %s4164_s2 }
 0x153   :  { %v485_v7 = vmax.f32 %v450_v8, 0.0  ;;  %v453_v23 = vadd.f32 %v3682_v17, %v4356_v44  ;;  %v1134_v34 = vsel %vm4585_vm10, %v3358_v25, %v1133_v27  ;;  %v1135_v21 = vrot.slane %v1133_v27, 4 }
 0x154   :  { %1152 = vst.msk [vmem:[#allocation3 + $0xc] sm:$0xf] %vm589_vm0, %v1134_v34 }
 0x155   :  { %v3585_v11 = vpack.c.bf16 %v485_v7, %v485_v7  ;;  %1023 = vrot.lane.b32.xlu1 %v1011_v37, %s4163_s0  ;;  %v486_v41 = vmax.f32 %v453_v23, 0.0  ;;  %v3683_v47 = vpop.f32.mrb[48].mxu0 }
 0x156   :  { %1025 = vrot.lane.b32.xlu0 %v1014_v31, %s4163_s0  ;;  %v3684_v35 = vpop.f32.mrb[49].mxu0  ;;  %v1121_v55 = vld [vmem:[#allocation2 + $0x50] sm:$0xf] }
 0x157   :  { %612 = vst.msk [vmem:[#allocation2 + $0x58] sm:$0xf] %vm589_vm0, %v3585_v11  ;;  %v3586_v50 = vpack.c.bf16 %v486_v41, %v486_v41  ;;  %v3685_v51 = vadd.f32 %v3684_v35, %v3683_v47  ;;  %v3686_v54 = vpop.f32.mrb[50].mxu0  ;;  %v1136_v0 = vrot.slane %v1121_v55, 7  ;;  %v1158_v18 = vld [vmem:[#allocation2 + $0x50] sm:$0xf] }
 0x158   :  { %v3687_v15 = vpop.f32.mrb[51].mxu0  ;;  %v1122_v42 = vld [vmem:[#allocation2 + $0x54] sm:$0xf]  ;;  %v1187_v22 = vld [vmem:[#allocation2 + $0x50] sm:$0xf]  ;;  %v1018_v47 = vrot.slane %v1016_v30, 4 }
 0x159   :  { %1071 = vrot.lane.b32.xlu1 %v1059_v36, %s4164_s2  ;;  %613 = vst.msk [vmem:[#allocation2 + $0x5c] sm:$0xf] %vm589_vm0, %v3586_v50  ;;  %v458_v56 = vadd.f32 %v3685_v51, %v4356_v44  ;;  %v1137_v2 = vsel %vm4585_vm10, %v1135_v21, %v1136_v0  ;;  %v1138_v28 = vrot.slane %v1136_v0, 4  ;;  %v1139_v46 = vrot.slane %v1122_v42, 7  ;;  %v1217_v38 = vld [vmem:[#allocation2 + $0x50] sm:$0xe] }
 0x15a   :  { %1103 = vrot.lane.b32.xlu0 %v1091_v43, %s4165_s22  ;;  %v1064_v44 = vrot.slane %v4747_v59, 7  ;;  %1153 = vst.msk [vmem:[#allocation3 + $0x1c] sm:$0xf] %vm589_vm0, %v1137_v2  ;;  %v1218_v52 = vld [vmem:[#allocation2 + $0x54] sm:$0xf]  ;;  %v3359_v8 = vrot.slane %v1217_v38, 9 }
 0x15b   :  { %v487_v1 = vmax.f32 %v458_v56, 0.0  ;;  %v1140_v9 = vsel %vm4585_vm10, %v1138_v28, %v1139_v46  ;;  %v1141_v14 = vrot.slane %v1139_v46, 4  ;;  %v1188_v25 = vld [vmem:[#allocation2 + $0x54] sm:$0xf]  ;;  %v1229_v61 = vrot.slane %v1218_v52, 5  ;;  %v3946_v38 = vld [vmem:[%s5420_s3 + $0x80] sm:$0xff]  }
 0x15c   :  { %1154 = vst.msk [vmem:[#allocation3 + $0x2c] sm:$0xf] %vm589_vm0, %v1140_v9  ;;  %v1065_v16 = vsel %vm4585_vm10, %v1063_v62, %v1064_v44  ;;  %v1159_v63 = vld [vmem:[#allocation2 + $0x54] sm:$0xf]  ;;  %v998_v11 = vld [vmem:[#allocation2 + $0x44] sm:$0x3] }
 0x15d   :  { %v3587_v3 = vpack.c.bf16 %v487_v1, %v487_v1  ;;  %1027 = vrot.lane.b32.xlu1 %v1017_v45, %s4163_s0  ;;  %v1230_v27 = vsel %vm4366_vm3, %v3359_v8, %v1229_v61  ;;  %v1231_v34 = vrot.slane %v1229_v61, 4  ;;  %v1019_v35 = vrot.slane %v998_v11, 7  ;;  %v1046_v50 = vld [vmem:[#allocation2 + $0x48] sm:$0x3]  ;;  %v1092_v51 = vld [vmem:[#allocation2 + $0x44] sm:$0xf] }
 0x15e   :  { %1073 = vrot.lane.b32.xlu0 %v1062_v5, %s4164_s2  ;;  %v1123_v13 = vld [vmem:[#allocation2 + $0x58] sm:$0xf]  ;;  %v1066_v36 = vrot.slane %v1064_v44, 4  ;;  %v1067_v33 = vrot.slane %v1046_v50, 7  ;;  %v1093_v43 = vld [vmem:[#allocation2 + $0x48] sm:$0x7] }
 0x15f   :  { %614 = vst.msk [vmem:[#allocation2 + $0x60] sm:$0xf] %vm589_vm0, %v3587_v3  ;;  %v1142_v32 = vrot.slane %v1123_v13, 7  ;;  %v1160_v26 = vld [vmem:[#allocation2 + $0x58] sm:$0xf]  ;;  %v1020_v21 = vsel %vm4585_vm10, %v1018_v47, %v1019_v35  ;;  %v3953_v47 = vld [vmem:[%s5420_s3 + $0xe0] sm:$0xff]  }
 0x160   :  { %v1124_v19 = vld [vmem:[#allocation2 + $0x5c] sm:$0x3]  ;;  %v1219_v17 = vld [vmem:[#allocation2 + $0x58] sm:$0xf]  ;;  %v1068_v30 = vsel %vm4585_vm10, %v1066_v36, %v1067_v33  ;;  %v3954_v50 = vld [vmem:[%s5420_s3 + $0xa0] sm:$0xff]  }
 0x161   :  { %1075 = vrot.lane.b32.xlu1 %v1065_v16, %s4164_s2  ;;  %v1143_v57 = vsel %vm4585_vm10, %v1141_v14, %v1142_v32  ;;  %v1144_v10 = vrot.slane %v1142_v32, 4  ;;  %v1145_v4 = vrot.slane %v1124_v19, 7  ;;  %v1220_v29 = vld [vmem:[#allocation2 + $0x5c] sm:$0xf]  ;;  %v1232_v7 = vrot.slane %v1219_v17, 5  ;;  %v3949_v17 = vld [vmem:[%s5420_s3 + $0xd0] sm:$0xff]  }
 0x162   :  { %1167 = vrot.lane.b32.xlu0 %v1157_v20, %s4163_s0  ;;  %1155 = vst.msk [vmem:[#allocation3 + $0x3c] sm:$0xf] %vm589_vm0, %v1143_v57  ;;  %v1190_v23 = vld [vmem:[#allocation2 + $0x5c] sm:$0xf]  ;;  %v1189_v37 = vld [vmem:[#allocation2 + $0x58] sm:$0xf] }
 0x163   :  { %v1146_v24 = vsel %vm4585_vm10, %v1144_v10, %v1145_v4  ;;  %v1234_v39 = vrot.slane %v1232_v7, 4  ;;  %v1235_v40 = vrot.slane %v1220_v29, 5  ;;  %v1233_v31 = vsel %vm4366_vm3, %v1231_v34, %v1232_v7  ;;  %v1161_v15 = vld [vmem:[#allocation2 + $0x5c] sm:$0x7]  ;;  %v3950_v7 = vld [vmem:[%s5420_s3 + $0x90] sm:$0xff]   ;;  %v3956_v33 = vld [vmem:[%s5420_s3 + $0xa8] sm:$0xff]  }
 0x164   :  { %1156 = vst.msk [vmem:[#allocation3 + $0x4c] sm:$0x7] %vm624_vm6, %v1146_v24  ;;  %vm772_vm0 = vcmask 1043200   ;;  %vm1754_vm6 = vcmask 1042944  }
 0x165   :  { %1169 = vrot.lane.b32.xlu1 %v1158_v18, %s4163_s0  ;;  %v1236_v41 = vsel %vm4366_vm3, %v1234_v39, %v1235_v40  ;;  %v1237_v54 = vrot.slane %v1235_v40, 4 }
 0x166   :  { %1197 = vrot.lane.b32.xlu0 %v1187_v22, %s4164_s2  ;;  %v1221_v49 = vld [vmem:[#allocation2 + $0x60] sm:$0xf] }
 0x167   :  { %v1238_v55 = vrot.slane %v1221_v49, 5  ;;  %v1191_v56 = vld [vmem:[#allocation2 + $0x60] sm:$0x7] }
 0x169   :  { %1199 = vrot.lane.b32.xlu1 %v1188_v25, %s4164_s2  ;;  %v1239_v48 = vsel %vm4366_vm3, %v1237_v54, %v1238_v55  ;;  %v1240_v0 = vrot.slane %v1238_v55, 4 }
 0x16a   :  { %1171 = vrot.lane.b32.xlu0 %v1159_v63, %s4163_s0  ;;  %v3947_v63 = vld [vmem:[%s5420_s3 + $0xc8] sm:$0xff]  }
 0x16d   :  { %1173 = vrot.lane.b32.xlu1 %v1160_v26, %s4163_s0  ;;  %v3948_v26 = vld [vmem:[%s5420_s3 + $0x88] sm:$0xff]  }
 0x16e   :  { %1241 = vrot.lane.b32.xlu0 %v1230_v27, %s4165_s22 }
 0x171   :  { %1203 = vrot.lane.b32.xlu1 %v1190_v23, %s4164_s2  ;;  %v3951_v23 = vld [vmem:[%s5420_s3 + $0xd8] sm:$0xff]  }
 0x172   :  { %1201 = vrot.lane.b32.xlu0 %v1189_v37, %s4164_s2  ;;  %v3952_v37 = vld [vmem:[%s5420_s3 + $0x98] sm:$0xff]  }
 0x175   :  { %1243 = vrot.lane.b32.xlu1 %v1233_v31, %s4165_s22 }
 0x176   :  { %1245 = vrot.lane.b32.xlu0 %v1236_v41, %s4165_s22 }
 0x179   :  { %1105 = vrot.lane.b32.xlu1 %v1092_v51, %s4165_s22  ;;  %v3955_v51 = vld [vmem:[%s5420_s3 + $0xe8] sm:$0xff]  }
 0x17a   :  { %1029 = vrot.lane.b32.xlu0 %v1020_v21, %s4163_s0 }
 0x17d   :  { %1247 = vrot.lane.b32.xlu1 %v1239_v48, %s4165_s22 }
 0x17e   :  { %1077 = vrot.lane.b32.xlu0 %v1068_v30, %s4164_s2  ;;  %v654_v6 = vpop.permute.xlu0 %653  ;;  %v3957_v30 = vld [vmem:[%s5420_s3 + $0xf0] sm:$0xff]  }
 0x17f   :  { %669 = vst.msk [vmem:[#allocation3] sm:$0xf] %vm668_vm11, %v654_v6 }
 0x181   :  { %1175 = vrot.lane.b32.xlu1 %v1161_v15, %s4163_s0 }
 0x182   :  { %1107 = vrot.lane.b32.xlu0 %v1093_v43, %s4165_s22  ;;  %v3958_v43 = vld [vmem:[%s5420_s3 + $0xb0] sm:$0xff]  }
 0x184   :  { %v656_v58 = vpop.permute.xlu0 %655 }
 0x185   :  { %1205 = vrot.lane.b32.xlu1 %v1191_v56, %s4164_s2  ;;  %670 = vst.msk [vmem:[#allocation3 + $0x10] sm:$0xf] %vm668_vm11, %v656_v58  ;;  %v3959_v56 = vld [vmem:[%s5420_s3 + $0xf8] sm:$0xff]  }
 0x187   :  { %v702_v59 = vpop.permute.xlu1 %701 }
 0x188   :  { %716 = vst.msk [vmem:[#allocation3 + $0x10] sm:$0xf] %vm714_vm12, %v702_v59  ;;  %v700_v42 = vpop.permute.xlu0 %699 }
 0x189   :  { %1249 = vrot.lane.b32.xlu1 %v1240_v0, %s4165_s22  ;;  %715 = vst.msk [vmem:[#allocation3] sm:$0xf] %vm714_vm12, %v700_v42  ;;  %v3960_v0 = vld [vmem:[%s5420_s3 + $0xb8] sm:$0xff]   ;;  %s4169_s3 = smov [#allocation8]  }
 0x18a   :  { %s3272_s26 = sshll.u32 %s4169_s3, 4  ;;  %s3273_s26 = int_to_ptr.vmem [resolvable:$true] %s3272_s26 }
 0x18b   :  { %v755_v1 = vpop.permute.xlu1 %754  ;;  %s4139_s27 = scalar_lea.vmem %s3273_s26, 32  ;;  %p4144_p1 = scmp.lt.s32.totalorder %s3273_s26, %s3273_s26 }
 0x18c   :  { %769 = vst.msk [vmem:[#allocation3 + $0x10] sm:$0xf] %vm767_vm13, %v755_v1  ;;  %v753_v2 = vpop.permute.xlu0 %752  ;;  %p4140_p0 = scmp.ne.s32.totalorder %s3273_s26, %s4139_s27  ;;  %p4145_p2 = scmp.lt.s32.totalorder %s4139_s27, %s4139_s27 }
 0x18d   :  { %768 = vst.msk [vmem:[#allocation3] sm:$0xf] %vm767_vm13, %v753_v2 }
 0x18e   :  { %p4146_p3 = por %p4145_p2, %p4144_p1 }
 0x18f   :  { %v660_v28 = vpop.permute.xlu1 %659 }
 0x190   :  { %672 = vst.msk [vmem:[#allocation3 + $0x30] sm:$0xf] %vm668_vm11, %v660_v28  ;;  %v658_v46 = vpop.permute.xlu0 %657  ;;  %p4147_p4 = pnand %p4146_p3, %p4140_p0 }
 0x191   :  { %671 = vst.msk [vmem:[#allocation3 + $0x20] sm:$0xf] %vm668_vm11, %v658_v46 }
 0x193   :  { %v706_v45 = vpop.permute.xlu1 %705 }
 0x194   :  { %718 = vst.msk [vmem:[#allocation3 + $0x30] sm:$0xf] %vm714_vm12, %v706_v45  ;;  %v704_v62 = vpop.permute.xlu0 %703  ;;  %v3939_v24 = vld [vmem:[#allocation3] ss:$16 sps:$4 sm:$0xff]  }
 0x195   :  { %717 = vst.msk [vmem:[#allocation3 + $0x20] sm:$0xf] %vm714_vm12, %v704_v62 }
 0x197   :  { %v759_v44 = vpop.permute.xlu1 %758 }
 0x198   :  { %771 = vst.msk [vmem:[#allocation3 + $0x30] sm:$0xf] %vm767_vm13, %v759_v44  ;;  %v757_v3 = vpop.permute.xlu0 %756 }
 0x199   :  { %770 = vst.msk [vmem:[#allocation3 + $0x20] sm:$0xf] %vm767_vm13, %v757_v3 }
 0x19b   :  { %v837_v5 = vpop.permute.xlu1 %836 }
 0x19c   :  { %851 = vst.msk [vmem:[#allocation3 + $0x4] sm:$0xf] %vm668_vm11, %v837_v5  ;;  %v662_v9 = vpop.permute.xlu0 %661 }
 0x19d   :  { %674 = vst.msk [vmem:[#allocation3 + $0x40] sm:$0x7] %vm673_vm14, %v662_v9 }
 0x19f   :  { %v839_v13 = vpop.permute.xlu1 %838 }
 0x1a0   :  { %852 = vst.msk [vmem:[#allocation3 + $0x14] sm:$0xf] %vm668_vm11, %v839_v13  ;;  %v708_v14 = vpop.permute.xlu0 %707 }
 0x1a1   :  { %720 = vst.msk [vmem:[#allocation3 + $0x40] sm:$0x7] %vm719_vm15, %v708_v14 }
 0x1a3   :  { %v887_v16 = vpop.permute.xlu1 %886 }
 0x1a4   :  { %900 = vst.msk [vmem:[#allocation3 + $0x14] sm:$0xf] %vm714_vm12, %v887_v16  ;;  %v761_v20 = vpop.permute.xlu0 %760 }
 0x1a5   :  { %773 = vst.msk [vmem:[#allocation3 + $0x40] sm:$0x7] %vm772_vm0, %v761_v20 }
 0x1a7   :  { %v938_v32 = vpop.permute.xlu1 %937 }
 0x1a8   :  { %951 = vst.msk [vmem:[#allocation3 + $0x14] sm:$0xf] %vm767_vm13, %v938_v32  ;;  %v885_v18 = vpop.permute.xlu0 %884 }
 0x1a9   :  { %899 = vst.msk [vmem:[#allocation3 + $0x4] sm:$0xf] %vm714_vm12, %v885_v18 }
 0x1ab   :  { %v843_v19 = vpop.permute.xlu1 %842 }
 0x1ac   :  { %854 = vst.msk [vmem:[#allocation3 + $0x34] sm:$0xf] %vm668_vm11, %v843_v19  ;;  %v936_v57 = vpop.permute.xlu0 %935 }
 0x1ad   :  { %950 = vst.msk [vmem:[#allocation3 + $0x4] sm:$0xf] %vm767_vm13, %v936_v57 }
 0x1af   :  { %v891_v10 = vpop.permute.xlu1 %890 }
 0x1b0   :  { %902 = vst.msk [vmem:[#allocation3 + $0x34] sm:$0xf] %vm714_vm12, %v891_v10  ;;  %v841_v4 = vpop.permute.xlu0 %840 }
 0x1b1   :  { %853 = vst.msk [vmem:[#allocation3 + $0x24] sm:$0xf] %vm668_vm11, %v841_v4 }
 0x1b3   :  { %v942_v22 = vpop.permute.xlu1 %941 }
 0x1b4   :  { %953 = vst.msk [vmem:[#allocation3 + $0x34] sm:$0xf] %vm767_vm13, %v942_v22  ;;  %v889_v52 = vpop.permute.xlu0 %888  ;;  %v3941_v25 = vld [vmem:[#allocation3 + $0x4] ss:$16 sps:$4 sm:$0xff]  }
 0x1b5   :  { %901 = vst.msk [vmem:[#allocation3 + $0x24] sm:$0xf] %vm714_vm12, %v889_v52  ;;  %1620 = vmatprep.mubr.bf16.mxu1 %v3941_v25 }
 0x1b6   :  { %1621 = vmatmul.mubr.bf16.vlgmr.msra.gmra.mrb[0].mxu1 %v3939_v24 }
 0x1b7   :  { %v845_v8 = vpop.permute.xlu1 %844  ;;  %3724 = vmatpush3.bf16.msra.mxu1 %v3946_v38 }
 0x1b8   :  { %855 = vst.msk [vmem:[#allocation3 + $0x44] sm:$0x7] %vm673_vm14, %v845_v8  ;;  %v940_v61 = vpop.permute.xlu0 %939  ;;  %3725 = vmatprep.subr.bf16.mxu1 %v3947_v63 }
 0x1b9   :  { %952 = vst.msk [vmem:[#allocation3 + $0x24] sm:$0xf] %vm767_vm13, %v940_v61 }
 0x1bb   :  { %v893_v27 = vpop.permute.xlu1 %892  ;;  %3726 = vmatpush3.bf16.msra.mxu1 %v3948_v26  ;;  %v1267_v11 = vld [vmem:[#allocation3 + $0x30] sm:$0xff]  ;;  %v3968_v26 = vld [vmem:[%s5422_s5 + $0x100] sm:$0xff]  }
 0x1bc   :  { %903 = vst.msk [vmem:[#allocation3 + $0x44] sm:$0x7] %vm719_vm15, %v893_v27  ;;  %v1022_v29 = vpop.permute.xlu0 %1021  ;;  %3727 = vmatprep.subr.bf16.mxu1 %v3949_v17  ;;  %v4166_v17 = vmov 0.0   ;;  %v3969_v27 = vld [vmem:[%s5422_s5 + $0x108] sm:$0xff]  }
 0x1bd   :  { %1036 = vst.msk [vmem:[#allocation3 + $0x8] sm:$0xf] %vm668_vm11, %v1022_v29  ;;  %3850 = vmatprep.subr.bf16.mxu0 %v4166_v17  ;;  %3858 = vmatprep.mubr.msk.bf16.mxu0 %vm4167_vm1, %v4166_v17  ;;  %v3970_v29 = vld [vmem:[%s5422_s5 + $0x110] sm:$0xff]  }
 0x1be   :  { %3851 = vmatpush3.bf16.msra.mxu0 %v3968_v26  ;;  %v3984_v26 = vld [vmem:[%s5422_s5 + $0x28] sm:$0xff]  }
 0x1bf   :  { %v944_v34 = vpop.permute.xlu1 %943  ;;  %3728 = vmatpush3.bf16.msra.mxu1 %v3950_v7  ;;  %3852 = vmatprep.subr.bf16.mxu0 %v4166_v17  ;;  %v3973_v7 = vld [vmem:[%s5422_s5 + $0x40] sm:$0xff]  }
 0x1c0   :  { %954 = vst.msk [vmem:[#allocation3 + $0x44] sm:$0x7] %vm772_vm0, %v944_v34  ;;  %v1100_v39 = vpop.permute.xlu0 %1099  ;;  %v1265_v40 = vld [vmem:[#allocation3 + $0x20] sm:$0xff]  ;;  %3729 = vmatprep.subr.bf16.mxu1 %v3951_v23 }
 0x1c1   :  { %v3942_v31 = vld [vmem:[#allocation3 + $0x24] ss:$16 sps:$4 sm:$0xff]   ;;  %v3365_v41 = vcombine.low %v1265_v40, %v1267_v11  ;;  %v3974_v23 = vld [vmem:[%s5422_s5] sm:$0xff]   ;;  %v3977_v40 = vld [vmem:[%s5422_s5 + $0x50] sm:$0xff]  }
 0x1c2   :  { %1628 = vmatprep.mubr.bf16.mxu1 %v3942_v31  ;;  %3853 = vmatpush3.bf16.msra.mxu0 %v3969_v27  ;;  %v3975_v34 = vld [vmem:[%s5422_s5 + $0x48] sm:$0xff]   ;;  %v3978_v11 = vld [vmem:[%s5422_s5 + $0x10] sm:$0xff]   ;;  %v3979_v31 = vld [vmem:[%s5422_s5 + $0x58] sm:$0xff]  }
 0x1c3   :  { %v1102_v35 = vpop.permute.xlu1 %1101  ;;  %1629 = vmatmul.mubr.bf16.gmra.mrb[4].mxu1 %v3365_v41  ;;  %3854 = vmatprep.subr.bf16.mxu0 %v4166_v17  ;;  %v3980_v41 = vld [vmem:[%s5422_s5 + $0x18] sm:$0xff]  }
 0x1c4   :  { %v1070_v49 = vpop.permute.xlu0 %1069  ;;  %3730 = vmatpush3.bf16.msra.mxu1 %v3952_v37  ;;  %v3971_v37 = vld [vmem:[%s5422_s5 + $0x118] sm:$0xff]  }
 0x1c5   :  { %1084 = vst.msk [vmem:[#allocation3 + $0x8] sm:$0xf] %vm714_vm12, %v1070_v49  ;;  %3731 = vmatprep.subr.bf16.mxu1 %v3953_v47 }
 0x1c6   :  { %1114 = vst.msk [vmem:[#allocation3 + $0x8] sm:$0xf] %vm767_vm13, %v1100_v39  ;;  %3855 = vmatpush3.bf16.msra.mxu0 %v3970_v29  ;;  %v3976_v39 = vld [vmem:[%s5422_s5 + $0x8] sm:$0xff]  }
 0x1c7   :  { %v1024_v54 = vpop.permute.xlu1 %1023  ;;  %v1269_v55 = vld [vmem:[#allocation3 + $0x40] sm:$0x77]  ;;  %3856 = vmatprep.subr.bf16.mxu0 %v4166_v17 }
 0x1c8   :  { %1037 = vst.msk [vmem:[#allocation3 + $0x18] sm:$0xf] %vm668_vm11, %v1024_v54  ;;  %v1026_v21 = vpop.permute.xlu0 %1025  ;;  %v3370_v36 = vcombine.high %v1269_v55, %v1269_v55  ;;  %3732 = vmatpush3.bf16.msra.mxu1 %v3954_v50  ;;  %v3369_v48 = vcombine.low %v1269_v55, %v1269_v55 }
 0x1c9   :  { %1038 = vst.msk [vmem:[#allocation3 + $0x28] sm:$0xf] %vm668_vm11, %v1026_v21  ;;  %3733 = vmatprep.subr.bf16.mxu1 %v3955_v51 }
 0x1ca   :  { %1636 = vmatprep.mubr.bf16.mxu1 %v3370_v36  ;;  %3857 = vmatpush3.bf16.msra.mxu0 %v3971_v37 }
 0x1cb   :  { %v1072_v6 = vpop.permute.xlu1 %1071  ;;  %1637 = vmatmul.mubr.bf16.gmra.mrb[8].mxu1 %v3369_v48 }
 0x1cc   :  { %1085 = vst.msk [vmem:[#allocation3 + $0x18] sm:$0xf] %vm714_vm12, %v1072_v6  ;;  %v1104_v15 = vpop.permute.xlu0 %1103  ;;  %3734 = vmatpush3.bf16.msra.mxu1 %v3956_v33 }
 0x1cd   :  { %1115 = vst.msk [vmem:[#allocation3 + $0x18] sm:$0xf] %vm767_vm13, %v1102_v35  ;;  %3735 = vmatprep.subr.bf16.mxu1 %v3957_v30 }
 0x1cf   :  { %v1028_v58 = vpop.permute.xlu1 %1027 }
 0x1d0   :  { %1039 = vst.msk [vmem:[#allocation3 + $0x38] sm:$0xf] %vm668_vm11, %v1028_v58  ;;  %v1074_v59 = vpop.permute.xlu0 %1073  ;;  %3736 = vmatpush3.bf16.msra.mxu1 %v3958_v43 }
 0x1d1   :  { %1086 = vst.msk [vmem:[#allocation3 + $0x28] sm:$0xf] %vm714_vm12, %v1074_v59  ;;  %3737 = vmatprep.subr.bf16.mxu1 %v3959_v56  ;;  %v4958_v59 = vld [vmem:[%s5421_s4] ss:$0 sm:$0xff] }
 0x1d2   :  { %1116 = vst.msk [vmem:[#allocation3 + $0x28] sm:$0xf] %vm767_vm13, %v1104_v15 }
 0x1d3   :  { %v1076_v42 = vpop.permute.xlu1 %1075 }
 0x1d4   :  { %1087 = vst.msk [vmem:[#allocation3 + $0x38] sm:$0xf] %vm714_vm12, %v1076_v42  ;;  %v1168_v1 = vpop.permute.xlu0 %1167  ;;  %3738 = vmatpush3.bf16.msra.mxu1 %v3960_v0  ;;  %v3961_v32 = vld [vmem:[#allocation3 + $0x8] ss:$16 sps:$4 sm:$0xff]  }
 0x1d5   :  { %1182 = vst.msk [vmem:[#allocation3 + $0xc] sm:$0xf] %vm668_vm11, %v1168_v1  ;;  %3757 = vmatprep.subr.bf16.mxu1 %v3973_v7  ;;  %v3985_v7 = vld [vmem:[%s5422_s5 + $0x70] sm:$0xff]  }
 0x1d7   :  { %v1170_v2 = vpop.permute.xlu1 %1169 }
 0x1d8   :  { %1183 = vst.msk [vmem:[#allocation3 + $0x1c] sm:$0xf] %vm668_vm11, %v1170_v2  ;;  %v1198_v28 = vpop.permute.xlu0 %1197 }
 0x1d9   :  { %1212 = vst.msk [vmem:[#allocation3 + $0xc] sm:$0xf] %vm714_vm12, %v1198_v28 }
 0x1db   :  { %v1200_v46 = vpop.permute.xlu1 %1199 }
 0x1dc   :  { %1213 = vst.msk [vmem:[#allocation3 + $0x1c] sm:$0xf] %vm714_vm12, %v1200_v46  ;;  %v1172_v45 = vpop.permute.xlu0 %1171 }
 0x1dd   :  { %1184 = vst.msk [vmem:[#allocation3 + $0x2c] sm:$0xf] %vm668_vm11, %v1172_v45 }
 0x1df   :  { %v1174_v62 = vpop.permute.xlu1 %1173 }
 0x1e0   :  { %1185 = vst.msk [vmem:[#allocation3 + $0x3c] sm:$0xf] %vm668_vm11, %v1174_v62  ;;  %v1242_v44 = vpop.permute.xlu0 %1241 }
 0x1e1   :  { %1256 = vst.msk [vmem:[#allocation3 + $0xc] sm:$0xf] %vm767_vm13, %v1242_v44 }
 0x1e3   :  { %v1204_v3 = vpop.permute.xlu1 %1203 }
 0x1e4   :  { %1215 = vst.msk [vmem:[#allocation3 + $0x3c] sm:$0xf] %vm714_vm12, %v1204_v3  ;;  %v1202_v5 = vpop.permute.xlu0 %1201 }
 0x1e5   :  { %1214 = vst.msk [vmem:[#allocation3 + $0x2c] sm:$0xf] %vm714_vm12, %v1202_v5 }
 0x1e7   :  { %v1244_v9 = vpop.permute.xlu1 %1243 }
 0x1e8   :  { %1257 = vst.msk [vmem:[#allocation3 + $0x1c] sm:$0xf] %vm767_vm13, %v1244_v9  ;;  %v1246_v13 = vpop.permute.xlu0 %1245 }
 0x1e9   :  { %1258 = vst.msk [vmem:[#allocation3 + $0x2c] sm:$0xf] %vm767_vm13, %v1246_v13 }
 0x1eb   :  { %v1106_v14 = vpop.permute.xlu1 %1105 }
 0x1ec   :  { %1117 = vst.msk [vmem:[#allocation3 + $0x38] sm:$0xf] %vm767_vm13, %v1106_v14  ;;  %v1030_v16 = vpop.permute.xlu0 %1029 }
 0x1ed   :  { %1040 = vst.msk [vmem:[#allocation3 + $0x48] sm:$0x7] %vm673_vm14, %v1030_v16 }
 0x1ef   :  { %v1248_v20 = vpop.permute.xlu1 %1247  ;;  %v3963_v18 = vld [vmem:[#allocation3 + $0xc] ss:$16 sps:$4 sm:$0xff]  }
 0x1f0   :  { %1259 = vst.msk [vmem:[#allocation3 + $0x3c] sm:$0xf] %vm767_vm13, %v1248_v20  ;;  %v1078_v19 = vpop.permute.xlu0 %1077  ;;  %1676 = vmatprep.mubr.bf16.mxu1 %v3963_v18  ;;  %v1266_v22 = vld [vmem:[#allocation3 + $0x28] sm:$0xff] }
 0x1f1   :  { %1088 = vst.msk [vmem:[#allocation3 + $0x48] sm:$0x7] %vm719_vm15, %v1078_v19  ;;  %1677 = vmatmul.mubr.bf16.vlgmr.msra.gmra.mrb[12].mxu1 %v3961_v32 }
 0x1f2   :  { %3758 = vmatpush3.bf16.msra.mxu1 %v3974_v23 }
 0x1f3   :  { %v1176_v57 = vpop.permute.xlu1 %1175  ;;  %3759 = vmatprep.subr.bf16.mxu1 %v3975_v34 }
 0x1f4   :  { %1186 = vst.msk [vmem:[#allocation3 + $0x4c] sm:$0x7] %vm673_vm14, %v1176_v57  ;;  %v1108_v10 = vpop.permute.xlu0 %1107 }
 0x1f5   :  { %1118 = vst.msk [vmem:[#allocation3 + $0x48] sm:$0x7] %vm772_vm0, %v1108_v10  ;;  %v3981_v10 = vld [vmem:[%s5422_s5 + $0x60] sm:$0xff]  }
 0x1f6   :  { %3760 = vmatpush3.bf16.msra.mxu1 %v3976_v39 }
 0x1f7   :  { %v1206_v4 = vpop.permute.xlu1 %1205  ;;  %v1268_v38 = vld [vmem:[#allocation3 + $0x38] sm:$0xff]  ;;  %3761 = vmatprep.subr.bf16.mxu1 %v3977_v40 }
 0x1f8   :  { %v3964_v52 = vld [vmem:[#allocation3 + $0x2c] ss:$16 sps:$4 sm:$0xff]   ;;  %1216 = vst.msk [vmem:[#allocation3 + $0x4c] sm:$0x7] %vm719_vm15, %v1206_v4  ;;  %v3367_v24 = vcombine.low %v1266_v22, %v1268_v38  ;;  %v3983_v22 = vld [vmem:[%s5422_s5 + $0x68] sm:$0xff]  }
 0x1f9   :  { %1684 = vmatprep.mubr.bf16.mxu1 %v3964_v52  ;;  %v3982_v4 = vld [vmem:[%s5422_s5 + $0x20] sm:$0xff]  }
 0x1fa   :  { %1685 = vmatmul.mubr.bf16.gmra.mrb[16].mxu1 %v3367_v24 }
 0x1fb   :  { %v1250_v25 = vpop.permute.xlu1 %1249  ;;  %3762 = vmatpush3.bf16.msra.mxu1 %v3978_v11  ;;  %v3986_v11 = vld [vmem:[%s5422_s5 + $0x30] sm:$0xff]  }
 0x1fc   :  { %1260 = vst.msk [vmem:[#allocation3 + $0x4c] sm:$0x7] %vm772_vm0, %v1250_v25  ;;  %3763 = vmatprep.subr.bf16.mxu1 %v3979_v31 }
 0x1ff   :  { %3764 = vmatpush3.bf16.msra.mxu1 %v3980_v41 }
 0x200   :  { %3765 = vmatprep.subr.bf16.mxu1 %v3981_v10 }
 0x203   :  { %v1270_v63 = vld [vmem:[#allocation3 + $0x48] sm:$0x77]  ;;  %3766 = vmatpush3.bf16.msra.mxu1 %v3982_v4 }
 0x204   :  { %v3372_v8 = vcombine.high %v1270_v63, %v1270_v63  ;;  %v3371_v61 = vcombine.low %v1270_v63, %v1270_v63  ;;  %3767 = vmatprep.subr.bf16.mxu1 %v3983_v22 }
 0x206   :  { %1692 = vmatprep.mubr.bf16.mxu1 %v3372_v8 }
 0x207   :  { %1693 = vmatmul.mubr.bf16.gmra.mrb[20].mxu1 %v3371_v61 }
 0x208   :  { %3768 = vmatpush3.bf16.msra.mxu1 %v3984_v26 }
 0x209   :  { %3769 = vmatprep.subr.bf16.mxu1 %v3985_v7 }
 0x20c   :  { %3770 = vmatpush3.bf16.msra.mxu1 %v3986_v11 }
 0x289   :  { %v3705_v47 = vpop.f32.mrb[0].mxu1 }
 0x28a   :  { %v3706_v35 = vpop.f32.mrb[1].mxu1 }
 0x28b   :  { %v3707_v49 = vadd.f32 %v3706_v35, %v3705_v47  ;;  %v3708_v50 = vpop.f32.mrb[2].mxu1  ;;  %v3987_v47 = vld [vmem:[%s5422_s5 + $0x78] sm:$0xff]  }
 0x28c   :  { %v3709_v51 = vpop.f32.mrb[3].mxu1  ;;  %3771 = vmatprep.subr.bf16.mxu1 %v3987_v47 }
 0x28d   :  { %v3710_v54 = vadd.f32 %v3709_v51, %v3708_v50  ;;  %v1623_v1 = vadd.f32 %v3707_v49, %v4958_v59 }
 0x28f   :  { %v1626_v45 = vadd.f32 %v3710_v54, %v4958_v59 }
 0x296   :  { %v3711_v55 = vpop.f32.mrb[4].mxu1 }
 0x297   :  { %v3712_v21 = vpop.f32.mrb[5].mxu1 }
 0x298   :  { %v3713_v36 = vadd.f32 %v3712_v21, %v3711_v55  ;;  %v3714_v33 = vpop.f32.mrb[6].mxu1 }
 0x299   :  { %v3715_v48 = vpop.f32.mrb[7].mxu1 }
 0x29a   :  { %v3716_v30 = vadd.f32 %v3715_v48, %v3714_v33  ;;  %v1631_v20 = vadd.f32 %v3713_v36, %v4958_v59 }
 0x29c   :  { %v1634_v38 = vadd.f32 %v3716_v30, %v4958_v59 }
 0x29e   :  { %v3717_v6 = vpop.f32.mrb[8].mxu1 }
 0x29f   :  { %v3718_v15 = vpop.f32.mrb[9].mxu1 }
 0x2a0   :  { %v4953_v43 = vadd.f32 %v3718_v15, %v3717_v6  ;;  %v3720_v56 = vpop.f32.mrb[10].mxu1  ;;  %v3988_v6 = vld [vmem:[%s5422_s5 + $0x38] sm:$0xff]   ;;  %v3989_v15 = vld [vmem:[%s5422_s5 + $0xc0] sm:$0xff]  }
 0x2a1   :  { %v3721_v58 = vpop.f32.mrb[11].mxu1  ;;  %3772 = vmatpush3.bf16.msra.mxu1 %v3988_v6 }
 0x2a2   :  { %v1639_v55 = vadd.f32 %v4953_v43, %v4958_v59  ;;  %3779 = vmatprep.subr.bf16.mxu1 %v3989_v15  ;;  %v3995_v15 = vld [vmem:[%s5422_s5 + $0x88] sm:$0xff]  }
 0x2c4   :  { %v3739_v0 = vpop.f32.mrb[12].mxu1 }
 0x2c5   :  { %v3740_v42 = vpop.f32.mrb[13].mxu1 }
 0x2c6   :  { %v3741_v2 = vadd.f32 %v3740_v42, %v3739_v0  ;;  %v3742_v28 = vpop.f32.mrb[14].mxu1 }
 0x2c7   :  { %v3743_v46 = vpop.f32.mrb[15].mxu1 }
 0x2c8   :  { %v1679_v62 = vadd.f32 %v3741_v2, %v1623_v1  ;;  %v3744_v44 = vadd.f32 %v3743_v46, %v3742_v28 }
 0x2ca   :  { %v1700_v3 = vmax.f32 %v1679_v62, 0.0  ;;  %v1682_v5 = vadd.f32 %v3744_v44, %v1626_v45 }
 0x2cc   :  { %v3588_v9 = vpack.c.bf16 %v1700_v3, %v1700_v3  ;;  %v1701_v13 = vmax.f32 %v1682_v5, 0.0 }
 0x2cd   :  { %v3745_v14 = vpop.f32.mrb[16].mxu1 }
 0x2ce   :  { %v3746_v16 = vpop.f32.mrb[17].mxu1  ;;  %1727 = vst.msk [vmem:[#allocation4] sm:$0xf] %vm1726_vm2, %v3588_v9  ;;  %v3589_v32 = vpack.c.bf16 %v1701_v13, %v1701_v13 }
 0x2cf   :  { %v3747_v18 = vadd.f32 %v3746_v16, %v3745_v14  ;;  %v3748_v19 = vpop.f32.mrb[18].mxu1 }
 0x2d0   :  { %v3749_v57 = vpop.f32.mrb[19].mxu1  ;;  %1728 = vst.msk [vmem:[#allocation4 + $0x4] sm:$0xf] %vm1726_vm2, %v3589_v32 }
 0x2d1   :  { %v1687_v52 = vadd.f32 %v3747_v18, %v1631_v20  ;;  %v3750_v24 = vadd.f32 %v3749_v57, %v3748_v19 }
 0x2d3   :  { %v1702_v25 = vmax.f32 %v1687_v52, 0.0  ;;  %v1690_v63 = vadd.f32 %v3750_v24, %v1634_v38 }
 0x2d5   :  { %v3590_v8 = vpack.c.bf16 %v1702_v25, %v1702_v25  ;;  %v1703_v61 = vmax.f32 %v1690_v63, 0.0  ;;  %v1737_v17 = vld [vmem:[#allocation4] sm:$0xe] }
 0x2d6   :  { %v1733_v27 = vld [vmem:[#allocation4] sm:$0xf]  ;;  %v3410_v37 = vrot.slane %v1737_v17, 9 }
 0x2d7   :  { %1729 = vst.msk [vmem:[#allocation4 + $0x8] sm:$0xf] %vm1726_vm2, %v3590_v8  ;;  %v3591_v29 = vpack.c.bf16 %v1703_v61, %v1703_v61  ;;  %1735 = vst.msk [vmem:[#allocation5] sm:$0xf] %vm1726_vm2, %v1733_v27  ;;  %v1738_v23 = vld [vmem:[#allocation4 + $0x4] sm:$0xf] }
 0x2d8   :  { %v1756_v34 = vld [vmem:[#allocation4] sm:$0xc]  ;;  %v1743_v39 = vrot.slane %v1738_v23, 5  ;;  %v1734_v40 = vld [vmem:[#allocation4 + $0x4] sm:$0x7] }
 0x2d9   :  { %1730 = vst.msk [vmem:[#allocation4 + $0xc] sm:$0xf] %vm1726_vm2, %v3591_v29  ;;  %v1757_v41 = vld [vmem:[#allocation4 + $0x4] sm:$0xf]  ;;  %v3411_v51 = vrot.slane %v1756_v34, 10 }
 0x2da   :  { %v3751_v31 = vpop.f32.mrb[20].mxu1  ;;  %1736 = vst.msk [vmem:[#allocation5 + $0x14] sm:$0x7] %vm1731_vm4, %v1734_v40  ;;  %v1744_v49 = vsel %vm4366_vm3, %v3410_v37, %v1743_v39  ;;  %v1745_v50 = vrot.slane %v1743_v39, 4  ;;  %v1764_v54 = vrot.slane %v1757_v41, 6 }
 0x2db   :  { %v3752_v35 = vpop.f32.mrb[21].mxu1  ;;  %1746 = vrot.lane.b32.xlu0 %v1744_v49, %s4164_s2  ;;  %v1773_v33 = vld [vmem:[#allocation4 + $0x4] sm:$0xe] }
 0x2dc   :  { %v3753_v21 = vadd.f32 %v3752_v35, %v3751_v31  ;;  %v3754_v36 = vpop.f32.mrb[22].mxu1  ;;  %1748 = vrot.lane.b32.xlu1 %v1745_v50, %s4164_s2  ;;  %v1765_v30 = vsel %vm4405_vm7, %v3411_v51, %v1764_v54  ;;  %v1807_v58 = vld [vmem:[#allocation4 + $0x4] sm:$0x8]  ;;  %v3412_v42 = vrot.slane %v1773_v33, 9  ;;  %v1766_v46 = vrot.slane %v1764_v54, 4 }
 0x2dd   :  { %v3755_v48 = vpop.f32.mrb[23].mxu1  ;;  %1771 = vst.msk [vmem:[#allocation5 + $0x4] sm:$0xf] %vm1726_vm2, %v1765_v30  ;;  %v1790_v0 = vld [vmem:[#allocation4 + $0x4] sm:$0xc]  ;;  %v3414_v10 = vrot.slane %v1807_v58, 11 }
 0x2de   :  { %v1695_v43 = vadd.f32 %v3753_v21, %v1639_v55  ;;  %v1774_v56 = vld [vmem:[#allocation4 + $0x8] sm:$0xf]  ;;  %v3413_v12 = vrot.slane %v1790_v0, 10  ;;  %v3993_v48 = vld [vmem:[%s5422_s5 + $0x80] sm:$0xff]   ;;  %v3994_v30 = vld [vmem:[%s5422_s5 + $0xc8] sm:$0xff]  }
 0x2df   :  { %v1808_v59 = vld [vmem:[#allocation4 + $0x8] sm:$0xf]  ;;  %v1779_v1 = vrot.slane %v1774_v56, 5  ;;  %v3997_v56 = vld [vmem:[%s5422_s5 + $0x90] sm:$0xff]  }
 0x2e0   :  { %v1815_v2 = vrot.slane %v1808_v59, 7  ;;  %v1758_v28 = vld [vmem:[#allocation4 + $0x8] sm:$0x1]  ;;  %v1866_v45 = vld [vmem:[#allocation4 + $0xc] sm:$0xf]  ;;  %v1704_v62 = vmax.f32 %v1695_v43, 0.0 }
 0x2e1   :  { %v1809_v44 = vld [vmem:[#allocation4 + $0xc] sm:$0x3]  ;;  %v1767_v3 = vrot.slane %v1758_v28, 6  ;;  %1868 = vst.msk [vmem:[#allocation5 + $0x10] sm:$0xf] %vm1726_vm2, %v1866_v45  ;;  %v1780_v5 = vsel %vm4366_vm3, %v3412_v42, %v1779_v1  ;;  %v1781_v9 = vrot.slane %v1779_v1, 4 }
 0x2e2   :  { %v1846_v13 = vld [vmem:[#allocation4 + $0xc] sm:$0xf]  ;;  %v1791_v14 = vld [vmem:[#allocation4 + $0x8] sm:$0xf]  ;;  %v3592_v16 = vpack.c.bf16 %v1704_v62, %v1704_v62  ;;  %1782 = vrot.lane.b32.xlu0 %v1780_v5, %s4164_s2  ;;  %v1817_v20 = vrot.slane %v1815_v2, 4  ;;  %v1818_v32 = vrot.slane %v1809_v44, 7  ;;  %v1816_v63 = vsel %vm4585_vm10, %v3414_v10, %v1815_v2 }
 0x2e3   :  { %v1768_v18 = vsel %vm4405_vm7, %v1766_v46, %v1767_v3  ;;  %v1792_v19 = vld [vmem:[#allocation4 + $0xc] sm:$0x1]  ;;  %v1828_v57 = vld [vmem:[#allocation4 + $0x8] sm:$0xc]  ;;  %1784 = vrot.lane.b32.xlu1 %v1781_v9, %s4164_s2  ;;  %v1798_v4 = vrot.slane %v1791_v14, 6  ;;  %v1853_v8 = vrot.slane %v1846_v13, 7 }
 0x2e4   :  { %1772 = vst.msk [vmem:[#allocation5 + $0x18] sm:$0x7] %vm1731_vm4, %v1768_v18  ;;  %v1801_v22 = vrot.slane %v1792_v19, 6  ;;  %v1829_v38 = vld [vmem:[#allocation4 + $0xc] sm:$0xf]  ;;  %v3415_v24 = vrot.slane %v1828_v57, 10  ;;  %v1819_v17 = vsel %vm4585_vm10, %v1817_v20, %v1818_v32 }
 0x2e5   :  { %1732 = vst.msk [vmem:[#allocation4 + $0x10] sm:$0x7] %vm1731_vm4, %v3592_v16  ;;  %v1845_v52 = vld [vmem:[#allocation4 + $0x8] sm:$0x8]  ;;  %v1836_v25 = vrot.slane %v1829_v38, 6  ;;  %v1799_v61 = vsel %vm4405_vm7, %v3413_v12, %v1798_v4  ;;  %v1800_v26 = vrot.slane %v1798_v4, 4 }
 0x2e6   :  { %1820 = vrot.lane.b32.xlu0 %v1816_v63, %s4164_s2  ;;  %1805 = vst.msk [vmem:[#allocation5 + $0x8] sm:$0xf] %vm1726_vm2, %v1799_v61  ;;  %v3416_v29 = vrot.slane %v1845_v52, 11  ;;  %v1855_v40 = vrot.slane %v1853_v8, 4  ;;  %vm2196_vm3 = vcmask 523264   ;;  %v3996_v43 = vld [vmem:[%s5422_s5 + $0xd0] sm:$0xff]  }
 0x2e7   :  { %v1837_v27 = vsel %vm4405_vm7, %v3415_v24, %v1836_v25  ;;  %1822 = vrot.lane.b32.xlu1 %v1819_v17, %s4164_s2  ;;  %v1802_v7 = vsel %vm4405_vm7, %v1800_v26, %v1801_v22  ;;  %v1838_v31 = vrot.slane %v1836_v25, 4  ;;  %v4001_v58 = vld [vmem:[%s5422_s5 + $0xd8] sm:$0xff]   ;;  %v4003_v42 = vld [vmem:[%s5422_s5 + $0xe0] sm:$0xff]   ;;  %v4005_v2 = vld [vmem:[%s5422_s5 + $0xe8] sm:$0xff]  }
 0x2e8   :  { %1843 = vst.msk [vmem:[#allocation5 + $0xc] sm:$0xf] %vm1726_vm2, %v1837_v27  ;;  %v1854_v23 = vsel %vm4585_vm10, %v3416_v29, %v1853_v8  ;;  %v4002_v0 = vld [vmem:[%s5422_s5 + $0x98] sm:$0xff]   ;;  %v4004_v1 = vld [vmem:[%s5422_s5 + $0xa0] sm:$0xff]   ;;  %v4006_v28 = vld [vmem:[%s5422_s5 + $0xa8] sm:$0xff]  }
 0x2e9   :  { %1806 = vst.msk [vmem:[#allocation5 + $0x1c] sm:$0x7] %vm1731_vm4, %v1802_v7  ;;  %v4007_v46 = vld [vmem:[%s5422_s5 + $0xf0] sm:$0xff]   ;;  %v4009_v62 = vld [vmem:[%s5422_s5 + $0xf8] sm:$0xff]  }
 0x2ea   :  { %1858 = vrot.lane.b32.xlu0 %v1854_v23, %s4164_s2  ;;  %v4008_v45 = vld [vmem:[%s5422_s5 + $0xb0] sm:$0xff]   ;;  %v4010_v44 = vld [vmem:[%s5422_s5 + $0xb8] sm:$0xff]  }
 0x2eb   :  { %v4011_v16 = vld [vmem:[%s5424_s7] ss:$16 sps:$4 sm:$0xff]   ;;  %v4013_v20 = vld [vmem:[%s5424_s7 + $0x4] ss:$16 sps:$4 sm:$0xff]   ;;  %v4014_v32 = vld [vmem:[%s5424_s7 + $0x8] ss:$16 sps:$4 sm:$0xff]  }
 0x2ec   :  { %v1867_v34 = vld [vmem:[#allocation4 + $0x10] sm:$0x7]  ;;  %v4016_v18 = vld [vmem:[%s5424_s7 + $0xc] ss:$16 sps:$4 sm:$0xff]   ;;  %v4017_v10 = vld [vmem:[%s5424_s7 + $0x20] ss:$16 sps:$4 sm:$0xff]  }
 0x2ed   :  { %v1847_v37 = vld [vmem:[#allocation4 + $0x10] sm:$0x3]  ;;  %1869 = vst.msk [vmem:[#allocation5 + $0x24] sm:$0x7] %vm1731_vm4, %v1867_v34  ;;  %v4022_v57 = vld [vmem:[%s5424_s7 + $0x2c] ss:$16 sps:$4 sm:$0xff]   ;;  %2873 = vmatprep.subr.bf16.mxu0 %v4016_v18 }
 0x2ee   :  { %v1830_v39 = vld [vmem:[#allocation4 + $0x10] sm:$0x1]  ;;  %v1856_v11 = vrot.slane %v1847_v37, 7  ;;  %v4020_v12 = vld [vmem:[%s5424_s7 + $0x28] ss:$16 sps:$4 sm:$0xff]  }
 0x2ef   :  { %v1839_v41 = vrot.slane %v1830_v39, 6  ;;  %v4019_v19 = vld [vmem:[%s5424_s7 + $0x24] ss:$16 sps:$4 sm:$0xff]   ;;  %v4028_v22 = vld [vmem:[%s5424_s7 + $0x4c] ss:$16 sps:$4 sm:$0xff]  }
 0x2f0   :  { %v1857_v47 = vsel %vm4585_vm10, %v1855_v40, %v1856_v11  ;;  %v4025_v4 = vld [vmem:[%s5424_s7 + $0x44] ss:$16 sps:$4 sm:$0xff]   ;;  %v4023_v38 = vld [vmem:[%s5424_s7 + $0x40] ss:$16 sps:$4 sm:$0xff]   ;;  %v4026_v52 = vld [vmem:[%s5424_s7 + $0x48] ss:$16 sps:$4 sm:$0xff]  }
 0x2f1   :  { %v1840_v35 = vsel %vm4405_vm7, %v1838_v31, %v1839_v41  ;;  %1860 = vrot.lane.b32.xlu1 %v1857_v47, %s4164_s2  ;;  %v4031_v24 = vld [vmem:[%s5424_s7 + $0x64] ss:$16 sps:$4 sm:$0xff]   ;;  %v4034_v25 = vld [vmem:[%s5424_s7 + $0x6c] ss:$16 sps:$4 sm:$0xff]   ;;  %v4029_v63 = vld [vmem:[%s5424_s7 + $0x60] ss:$16 sps:$4 sm:$0xff]  }
 0x2f2   :  { %1844 = vst.msk [vmem:[#allocation5 + $0x20] sm:$0x7] %vm1731_vm4, %v1840_v35  ;;  %v4032_v8 = vld [vmem:[%s5424_s7 + $0x68] ss:$16 sps:$4 sm:$0xff]   ;;  %v4037_v61 = vld [vmem:[%s5424_s7 + $0x84] ss:$16 sps:$4 sm:$0xff]  }
 0x2f3   :  { %v4040_v26 = vld [vmem:[%s5424_s7 + $0x8c] ss:$16 sps:$4 sm:$0xff]   ;;  %v4035_v17 = vld [vmem:[%s5424_s7 + $0x80] ss:$16 sps:$4 sm:$0xff]   ;;  %v4038_v27 = vld [vmem:[%s5424_s7 + $0x88] ss:$16 sps:$4 sm:$0xff]  }
 0x2f4   :  { %v3972_v49 = vld [vmem:[#allocation5 + $0x10] ss:$20 sps:$4 sm:$0x7f]   ;;  %v4043_v29 = vld [vmem:[%s5424_s7 + $0xa4] ss:$16 sps:$4 sm:$0xff]   ;;  %vm2336_vm7 = vcmask 516096  }
 0x2f5   :  { %3859 = vmatmul.mubr.msk.bf16.vlgmr.msra.gmra.mrb[52].mxu0 %vm2196_vm3, %v3972_v49  ;;  %v4046_v7 = vld [vmem:[%s5424_s7 + $0xac] ss:$16 sps:$4 sm:$0xff]   ;;  %v4041_v23 = vld [vmem:[%s5424_s7 + $0xa0] ss:$16 sps:$4 sm:$0xff]   ;;  %v4044_v34 = vld [vmem:[%s5424_s7 + $0xa8] ss:$16 sps:$4 sm:$0xff]  }
 0x2f6   :  { %2874 = vmatpush1.bf16.msra.mxu0 %v4014_v32  ;;  %v4049_v37 = vld [vmem:[%s5424_s7 + $0xc4] ss:$16 sps:$4 sm:$0xff]   ;;  %v4052_v39 = vld [vmem:[%s5424_s7 + $0xcc] ss:$16 sps:$4 sm:$0xff]   ;;  %v4047_v40 = vld [vmem:[%s5424_s7 + $0xc0] ss:$16 sps:$4 sm:$0xff]  }
 0x2f7   :  { %2875 = vmatprep.subr.bf16.mxu0 %v4022_v57  ;;  %v4050_v11 = vld [vmem:[%s5424_s7 + $0xc8] ss:$16 sps:$4 sm:$0xff]   ;;  %v4055_v31 = vld [vmem:[%s5424_s7 + $0xe4] ss:$16 sps:$4 sm:$0xff]   ;;  %v4058_v41 = vld [vmem:[%s5424_s7 + $0xec] ss:$16 sps:$4 sm:$0xff]  }
 0x2f8   :  { %v4053_v47 = vld [vmem:[%s5424_s7 + $0xe0] ss:$16 sps:$4 sm:$0xff]   ;;  %v4056_v35 = vld [vmem:[%s5424_s7 + $0xe8] ss:$16 sps:$4 sm:$0xff]   ;;  %v4061_v49 = vld [vmem:[%s5424_s7 + $0x104] ss:$16 sps:$4 sm:$0xff]  }
 0x2fa   :  { %2876 = vmatpush1.bf16.msra.mxu0 %v4020_v12 }
 0x2fb   :  { %2877 = vmatprep.subr.bf16.mxu0 %v4028_v22 }
 0x2fe   :  { %2878 = vmatpush1.bf16.msra.mxu0 %v4026_v52 }
 0x2ff   :  { %2879 = vmatprep.subr.bf16.mxu0 %v4034_v25 }
 0x302   :  { %2880 = vmatpush1.bf16.msra.mxu0 %v4032_v8 }
 0x303   :  { %2881 = vmatprep.subr.bf16.mxu0 %v4040_v26 }
 0x306   :  { %2882 = vmatpush1.bf16.msra.mxu0 %v4038_v27  ;;  %v4094_v27 = vld [vmem:[%s5424_s7 + $0x1ac] ss:$16 sps:$4 sm:$0xff]  }
 0x307   :  { %2883 = vmatprep.subr.bf16.mxu0 %v4046_v7  ;;  %v4100_v7 = vld [vmem:[%s5424_s7 + $0x1cc] ss:$16 sps:$4 sm:$0xff]  }
 0x30a   :  { %2884 = vmatpush1.bf16.msra.mxu0 %v4044_v34  ;;  %v4098_v34 = vld [vmem:[%s5424_s7 + $0x1c8] ss:$16 sps:$4 sm:$0xff]  }
 0x30b   :  { %2885 = vmatprep.subr.bf16.mxu0 %v4052_v39 }
 0x30e   :  { %2886 = vmatpush1.bf16.msra.mxu0 %v4050_v11 }
 0x30f   :  { %2887 = vmatprep.subr.bf16.mxu0 %v4058_v41 }
 0x312   :  { %2888 = vmatpush1.bf16.msra.mxu0 %v4056_v35 }
 0x34d   :  { %v1747_v50 = vpop.permute.xlu0 %1746 }
 0x34e   :  { %1753 = vst.msk [vmem:[#allocation5] sm:$0xf] %vm1752_vm5, %v1747_v50  ;;  %v1749_v51 = vpop.permute.xlu1 %1748  ;;  %v4064_v50 = vld [vmem:[%s5424_s7 + $0x10c] ss:$16 sps:$4 sm:$0xff]  }
 0x34f   :  { %1755 = vst.msk [vmem:[#allocation5 + $0x14] sm:$0x7] %vm1754_vm6, %v1749_v51  ;;  %v4059_v51 = vld [vmem:[%s5424_s7 + $0x100] ss:$16 sps:$4 sm:$0xff]   ;;  %2889 = vmatprep.subr.bf16.mxu0 %v4064_v50 }
 0x354   :  { %v1783_v54 = vpop.permute.xlu0 %1782 }
 0x355   :  { %1788 = vst.msk [vmem:[#allocation5 + $0x4] sm:$0xf] %vm1752_vm5, %v1783_v54  ;;  %v1785_v53 = vpop.permute.xlu1 %1784  ;;  %v4062_v54 = vld [vmem:[%s5424_s7 + $0x108] ss:$16 sps:$4 sm:$0xff]  }
 0x356   :  { %1789 = vst.msk [vmem:[#allocation5 + $0x18] sm:$0x7] %vm1754_vm6, %v1785_v53  ;;  %v3990_v36 = vld [vmem:[#allocation5] ss:$20 sps:$4 sm:$0x7f]   ;;  %2890 = vmatpush1.bf16.msra.mxu0 %v4062_v54 }
 0x357   :  { %v4067_v53 = vld [vmem:[%s5424_s7 + $0x124] ss:$16 sps:$4 sm:$0xff]  }
 0x358   :  { %v1821_v60 = vpop.permute.xlu0 %1820 }
 0x359   :  { %1826 = vst.msk [vmem:[#allocation5 + $0x8] sm:$0xf] %vm1752_vm5, %v1821_v60  ;;  %v1823_v55 = vpop.permute.xlu1 %1822  ;;  %v4070_v60 = vld [vmem:[%s5424_s7 + $0x12c] ss:$16 sps:$4 sm:$0xff]  }
 0x35a   :  { %1827 = vst.msk [vmem:[#allocation5 + $0x1c] sm:$0x7] %vm1754_vm6, %v1823_v55  ;;  %v4065_v55 = vld [vmem:[%s5424_s7 + $0x120] ss:$16 sps:$4 sm:$0xff]   ;;  %2891 = vmatprep.subr.bf16.mxu0 %v4070_v60 }
 0x35c   :  { %v1859_v21 = vpop.permute.xlu0 %1858 }
 0x35d   :  { %1864 = vst.msk [vmem:[#allocation5 + $0xc] sm:$0xf] %vm1752_vm5, %v1859_v21  ;;  %v3992_v33 = vld [vmem:[#allocation5 + $0x4] ss:$20 sps:$4 sm:$0x7f]  }
 0x35e   :  { %2232 = vmatprep.mubr.bf16.mxu1 %v3992_v33  ;;  %v4068_v21 = vld [vmem:[%s5424_s7 + $0x128] ss:$16 sps:$4 sm:$0xff]   ;;  %v4076_v33 = vld [vmem:[%s5424_s7 + $0x14c] ss:$16 sps:$4 sm:$0xff]  }
 0x35f   :  { %2233 = vmatmul.mubr.bf16.vlgmr.msra.gmra.mrb[24].mxu1 %v3990_v36  ;;  %v4073_v36 = vld [vmem:[%s5424_s7 + $0x144] ss:$16 sps:$4 sm:$0xff]   ;;  %2892 = vmatpush1.bf16.msra.mxu0 %v4068_v21 }
 0x360   :  { %3780 = vmatpush3.bf16.msra.mxu1 %v3993_v48  ;;  %v4071_v48 = vld [vmem:[%s5424_s7 + $0x140] ss:$16 sps:$4 sm:$0xff]   ;;  %2893 = vmatprep.subr.bf16.mxu0 %v4076_v33 }
 0x361   :  { %3781 = vmatprep.subr.bf16.mxu1 %v3994_v30  ;;  %v3998_v3 = vld [vmem:[#allocation5 + $0x8] ss:$20 sps:$4 sm:$0x7f]   ;;  %v4074_v30 = vld [vmem:[%s5424_s7 + $0x148] ss:$16 sps:$4 sm:$0xff]  }
 0x362   :  { %v4107_v21 = vld [vmem:[%s5426_s9 + $0x40] sm:$0xff]  }
 0x363   :  { %v1861_v6 = vpop.permute.xlu1 %1860  ;;  %2894 = vmatpush1.bf16.msra.mxu0 %v4074_v30 }
 0x364   :  { %1865 = vst.msk [vmem:[#allocation5 + $0x20] sm:$0x7] %vm1754_vm6, %v1861_v6  ;;  %3782 = vmatpush3.bf16.msra.mxu1 %v3995_v15  ;;  %v4079_v6 = vld [vmem:[%s5424_s7 + $0x164] ss:$16 sps:$4 sm:$0xff]   ;;  %v4082_v15 = vld [vmem:[%s5424_s7 + $0x16c] ss:$16 sps:$4 sm:$0xff]  }
 0x365   :  { %3783 = vmatprep.subr.bf16.mxu1 %v3996_v43  ;;  %v4077_v43 = vld [vmem:[%s5424_s7 + $0x160] ss:$16 sps:$4 sm:$0xff]   ;;  %2895 = vmatprep.subr.bf16.mxu0 %v4082_v15 }
 0x368   :  { %3784 = vmatpush3.bf16.msra.mxu1 %v3997_v56  ;;  %v4080_v56 = vld [vmem:[%s5424_s7 + $0x168] ss:$16 sps:$4 sm:$0xff]  }
 0x369   :  { %3785 = vmatprep.subr.bf16.mxu1 %v4001_v58  ;;  %v4085_v58 = vld [vmem:[%s5424_s7 + $0x184] ss:$16 sps:$4 sm:$0xff]   ;;  %2896 = vmatpush1.bf16.msra.mxu0 %v4080_v56 }
 0x36a   :  { %v4110_v56 = vld [vmem:[%s5426_s9 + $0x80] sm:$0xff]  }
 0x36b   :  { %v4000_v59 = vld [vmem:[#allocation5 + $0xc] ss:$20 sps:$4 sm:$0x7f]  }
 0x36c   :  { %2273 = vmatprep.mubr.bf16.mxu1 %v4000_v59  ;;  %3786 = vmatpush3.bf16.msra.mxu1 %v4002_v0  ;;  %v4088_v59 = vld [vmem:[%s5424_s7 + $0x18c] ss:$16 sps:$4 sm:$0xff]   ;;  %v4083_v0 = vld [vmem:[%s5424_s7 + $0x180] ss:$16 sps:$4 sm:$0xff]  }
 0x36d   :  { %3787 = vmatprep.subr.bf16.mxu1 %v4003_v42  ;;  %v4086_v42 = vld [vmem:[%s5424_s7 + $0x188] ss:$16 sps:$4 sm:$0xff]   ;;  %2897 = vmatprep.subr.bf16.mxu0 %v4088_v59 }
 0x36e   :  { %2898 = vmatpush1.bf16.msra.mxu0 %v4086_v42  ;;  %v4111_v59 = vld [vmem:[%s5426_s9 + $0x48] sm:$0xff]  }
 0x36f   :  { %2899 = vmatprep.subr.bf16.mxu0 %v4094_v27  ;;  %v4113_v42 = vld [vmem:[%s5426_s9 + $0x8] sm:$0xff]  }
 0x370   :  { %3788 = vmatpush3.bf16.msra.mxu1 %v4004_v1 }
 0x371   :  { %3789 = vmatprep.subr.bf16.mxu1 %v4005_v2 }
 0x374   :  { %3790 = vmatpush3.bf16.msra.mxu1 %v4006_v28 }
 0x375   :  { %3791 = vmatprep.subr.bf16.mxu1 %v4007_v46 }
 0x378   :  { %3792 = vmatpush3.bf16.msra.mxu1 %v4008_v45 }
 0x379   :  { %3793 = vmatprep.subr.bf16.mxu1 %v4009_v62 }
 0x37c   :  { %3794 = vmatpush3.bf16.msra.mxu1 %v4010_v44  ;;  %v3417_v44 = vld [vmem:[%s5423_s6] ss:$0 sm:$0xff] }
 0x37d   :  { %2832 = vmatprep.subr.bf16.mxu1 %v4013_v20 }
 0x37f   :  { %2274 = vmatmul.mubr.bf16.vlgmr.msra.gmra.mrb[28].mxu1 %v3998_v3 }
 0x380   :  { %2833 = vmatpush1.bf16.msra.mxu1 %v4011_v16 }
 0x381   :  { %2834 = vmatprep.subr.bf16.mxu1 %v4019_v19 }
 0x384   :  { %2835 = vmatpush1.bf16.msra.mxu1 %v4017_v10 }
 0x385   :  { %2836 = vmatprep.subr.bf16.mxu1 %v4025_v4 }
 0x388   :  { %2837 = vmatpush1.bf16.msra.mxu1 %v4023_v38 }
 0x389   :  { %2838 = vmatprep.subr.bf16.mxu1 %v4031_v24  ;;  %v4168_v24 = vmov 1966171168  }
 0x38a   :  { %v2349_v25 = vunpack.c.l.s4 %v4168_v24  ;;  %v4136_v24 = vld [vmem:[%s5426_s9 + $0xf8] sm:$0xff]  }
 0x38c   :  { %2839 = vmatpush1.bf16.msra.mxu1 %v4029_v63  ;;  %v2351_v63 = vlaneseq  ;;  %v2350_v26 = vunpack.c.0.s8 %v2349_v25  ;;  %v4137_v25 = vld [vmem:[%s5426_s9 + $0x38] sm:$0xff]  }
 0x38d   :  { %2840 = vmatprep.subr.bf16.mxu1 %v4037_v61  ;;  %v4089_v61 = vld [vmem:[%s5424_s7 + $0x1a0] ss:$16 sps:$4 sm:$0xff]  }
 0x390   :  { %2841 = vmatpush1.bf16.msra.mxu1 %v4035_v17  ;;  %v5265_v17 = vshrl.u32 %v2351_v63, 7  ;;  %v4138_v63 = vld [vmem:[%s5426_s9 + $0xb8] sm:$0xff]  }
 0x391   :  { %2842 = vmatprep.subr.bf16.mxu1 %v4043_v29  ;;  %v4097_v29 = vld [vmem:[%s5424_s7 + $0x1c4] ss:$16 sps:$4 sm:$0xff]  }
 0x392   :  { %v2353_v39 = vsub.s32 %v2350_v26, %v5265_v17  ;;  %v2481_v26 = vsub.s32 3, %v5265_v17 }
 0x394   :  { %2843 = vmatpush1.bf16.msra.mxu1 %v4041_v23  ;;  %v4095_v23 = vld [vmem:[%s5424_s7 + $0x1c0] ss:$16 sps:$4 sm:$0xff]  }
 0x395   :  { %2844 = vmatprep.subr.bf16.mxu1 %v4049_v37  ;;  %v4103_v37 = vld [vmem:[%s5424_s7 + $0x1e4] ss:$16 sps:$4 sm:$0xff]  }
 0x398   :  { %2845 = vmatpush1.bf16.msra.mxu1 %v4047_v40  ;;  %v4106_v40 = vld [vmem:[%s5424_s7 + $0x1ec] ss:$16 sps:$4 sm:$0xff]  }
 0x399   :  { %2846 = vmatprep.subr.bf16.mxu1 %v4055_v31 }
 0x39c   :  { %2847 = vmatpush1.bf16.msra.mxu1 %v4053_v47  ;;  %v4101_v47 = vld [vmem:[%s5424_s7 + $0x1e0] ss:$16 sps:$4 sm:$0xff]  }
 0x39d   :  { %2848 = vmatprep.subr.bf16.mxu1 %v4061_v49  ;;  %v4104_v49 = vld [vmem:[%s5424_s7 + $0x1e8] ss:$16 sps:$4 sm:$0xff]  }
 0x3a0   :  { %2849 = vmatpush1.bf16.msra.mxu1 %v4059_v51 }
 0x3a1   :  { %2850 = vmatprep.subr.bf16.mxu1 %v4067_v53 }
 0x3a4   :  { %2851 = vmatpush1.bf16.msra.mxu1 %v4065_v55 }
 0x3a5   :  { %2852 = vmatprep.subr.bf16.mxu1 %v4073_v36  ;;  %v4108_v36 = vld [vmem:[%s5426_s9 + $0xc0] sm:$0xff]  }
 0x3a8   :  { %2853 = vmatpush1.bf16.msra.mxu1 %v4071_v48 }
 0x3a9   :  { %2854 = vmatprep.subr.bf16.mxu1 %v4079_v6 }
 0x3ac   :  { %2855 = vmatpush1.bf16.msra.mxu1 %v4077_v43  ;;  %v4109_v43 = vld [vmem:[%s5426_s9] sm:$0xff]  }
 0x3ad   :  { %2856 = vmatprep.subr.bf16.mxu1 %v4085_v58 }
 0x3b0   :  { %2857 = vmatpush1.bf16.msra.mxu1 %v4083_v0  ;;  %v4112_v0 = vld [vmem:[%s5426_s9 + $0xc8] sm:$0xff]  }
 0x3c8   :  { %v5089_v5 = vpop.f32.mrb[52].mxu0 }
 0x3c9   :  { %v3860_v9 = vpop.f32.mrb[53].mxu0 }
 0x3ca   :  { %v5091_v13 = vpop.f32.mrb[54].mxu0 }
 0x3cb   :  { %v3861_v14 = vpop.f32.mrb[55].mxu0 }
 0x432   :  { %v3773_v1 = vpop.f32.mrb[24].mxu1 }
 0x433   :  { %v3774_v2 = vpop.f32.mrb[25].mxu1 }
 0x434   :  { %v3775_v28 = vadd.f32 %v3774_v2, %v3773_v1  ;;  %v3776_v46 = vpop.f32.mrb[26].mxu1  ;;  %v4114_v1 = vld [vmem:[%s5426_s9 + $0x88] sm:$0xff]   ;;  %v4115_v2 = vld [vmem:[%s5426_s9 + $0x50] sm:$0xff]  }
 0x435   :  { %v3777_v45 = vpop.f32.mrb[27].mxu1 }
 0x436   :  { %v3778_v62 = vadd.f32 %v3777_v45, %v3776_v46  ;;  %v2235_v14 = vadd.f32 %v3775_v28, %v3417_v44  ;;  %v4116_v28 = vld [vmem:[%s5426_s9 + $0xd0] sm:$0xff]  }
 0x437   :  { %v4117_v46 = vld [vmem:[%s5426_s9 + $0x10] sm:$0xff]  }
 0x438   :  { %v2238_v18 = vadd.f32 %v3778_v62, %v3417_v44  ;;  %v4118_v45 = vld [vmem:[%s5426_s9 + $0x90] sm:$0xff]   ;;  %v4119_v62 = vld [vmem:[%s5426_s9 + $0x58] sm:$0xff]  }
 0x439   :  { %v4120_v44 = vld [vmem:[%s5426_s9 + $0xd8] sm:$0xff]  }
 0x452   :  { %v3795_v3 = vpop.f32.mrb[28].mxu1 }
 0x453   :  { %v3796_v9 = vpop.f32.mrb[29].mxu1 }
 0x454   :  { %v3797_v16 = vadd.f32 %v3796_v9, %v3795_v3  ;;  %v3798_v20 = vpop.f32.mrb[30].mxu1  ;;  %v4121_v3 = vld [vmem:[%s5426_s9 + $0x18] sm:$0xff]  }
 0x455   :  { %v3799_v32 = vpop.f32.mrb[31].mxu1  ;;  %v4122_v9 = vld [vmem:[%s5426_s9 + $0x98] sm:$0xff]  }
 0x456   :  { %v2276_v19 = vadd.f32 %v3797_v16, %v2235_v14  ;;  %v3800_v57 = vadd.f32 %v3799_v32, %v3798_v20  ;;  %v4123_v14 = vld [vmem:[%s5426_s9 + $0x60] sm:$0xff]  }
 0x457   :  { %v4124_v16 = vld [vmem:[%s5426_s9 + $0xe0] sm:$0xff]  }
 0x458   :  { %v2317_v10 = vadd.f32 %v5089_v5, %v2276_v19  ;;  %v2279_v12 = vadd.f32 %v3800_v57, %v2238_v18  ;;  %v4091_v5 = vld [vmem:[%s5424_s7 + $0x1a4] ss:$16 sps:$4 sm:$0xff]   ;;  %v4127_v18 = vld [vmem:[%s5426_s9 + $0x68] sm:$0xff]  }
 0x459   :  { %2858 = vmatprep.subr.bf16.mxu1 %v4091_v5  ;;  %v4125_v20 = vld [vmem:[%s5426_s9 + $0x20] sm:$0xff]   ;;  %v4128_v19 = vld [vmem:[%s5426_s9 + $0xe8] sm:$0xff]  }
 0x45a   :  { %v2323_v4 = vmax.f32 %v2317_v10, 0.0  ;;  %v2320_v22 = vadd.f32 %v5091_v13, %v2279_v12  ;;  %v4092_v13 = vld [vmem:[%s5424_s7 + $0x1a8] ss:$16 sps:$4 sm:$0xff]   ;;  %2859 = vmatpush1.bf16.msra.mxu1 %v4089_v61  ;;  %v4126_v32 = vld [vmem:[%s5426_s9 + $0xa0] sm:$0xff]   ;;  %v4131_v12 = vld [vmem:[%s5426_s9 + $0x70] sm:$0xff]   ;;  %v2477_v61 = vsub.s32 2, %v5265_v17 }
 0x45b   :  { %2900 = vmatpush1.bf16.msra.mxu0 %v4092_v13  ;;  %2860 = vmatprep.subr.bf16.mxu1 %v4097_v29  ;;  %v4129_v57 = vld [vmem:[%s5426_s9 + $0x28] sm:$0xff]   ;;  %v2465_v5 = vld [vmem:[%s5425_s8] sm:$0xf]  ;;  %v2473_v13 = vsub.s32 1, %v5265_v17 }
 0x45c   :  { %v3593_v38 = vpack.c.bf16 %v2323_v4, %v2323_v4  ;;  %v2324_v52 = vmax.f32 %v2320_v22, 0.0  ;;  %2901 = vmatprep.subr.bf16.mxu0 %v4100_v7  ;;  %v4130_v10 = vld [vmem:[%s5426_s9 + $0xa8] sm:$0xff]   ;;  %v4132_v4 = vld [vmem:[%s5426_s9 + $0xf0] sm:$0xff]   ;;  %v2478_v29 = vrot.slane %v2465_v5, %v2477_v61 }
 0x45d   :  { %v4133_v22 = vld [vmem:[%s5426_s9 + $0x30] sm:$0xff]   ;;  %v2474_v7 = vrot.slane %v2465_v5, %v2473_v13 }
 0x45e   :  { %2333 = vst.msk [vmem:[#allocation6] sm:$0xf] %vm1726_vm2, %v3593_v38  ;;  %v3594_v8 = vpack.c.bf16 %v2324_v52, %v2324_v52  ;;  %2861 = vmatpush1.bf16.msra.mxu1 %v4095_v23  ;;  %v4134_v38 = vld [vmem:[%s5426_s9 + $0xb0] sm:$0xff]   ;;  %v4135_v52 = vld [vmem:[%s5426_s9 + $0x78] sm:$0xff]   ;;  %v2482_v23 = vrot.slane %v2465_v5, %v2481_v26 }
 0x45f   :  { %2902 = vmatpush1.bf16.msra.mxu0 %v4098_v34  ;;  %2862 = vmatprep.subr.bf16.mxu1 %v4103_v37 }
 0x460   :  { %2334 = vst.msk [vmem:[#allocation6 + $0x4] sm:$0x7] %vm1731_vm4, %v3594_v8  ;;  %2903 = vmatprep.subr.bf16.mxu0 %v4106_v40  ;;  %v2469_v8 = vsub.s32 0, %v5265_v17 }
 0x462   :  { %2863 = vmatpush1.bf16.msra.mxu1 %v4101_v47  ;;  %v2470_v27 = vrot.slane %v2465_v5, %v2469_v8 }
 0x463   :  { %2904 = vmatpush1.bf16.msra.mxu0 %v4104_v49  ;;  %3806 = vmatprep.subr.bf16.mxu1 %v4107_v21 }
 0x464   :  { %3828 = vmatprep.subr.bf16.mxu0 %v4108_v36 }
 0x465   :  { %v3462_v11 = vld.sshfl [vmem:[#allocation6] sm:$0x10 pattern:$0x75316420]  ;;  %v2335_v31 = vld [vmem:[#allocation6] sm:$0x1] }
 0x466   :  { %v2347_v41 = vcombine.high %v3462_v11, %v3462_v11  ;;  %2337 = vst.msk [vmem:[#allocation7] sm:$0x1] %vm2336_vm7, %v2335_v31 }
 0x467   :  { %v3464_v35 = vld.sshfl [vmem:[#allocation6 + $0x4] sm:$0x2 pattern:$0x75316420] }
 0x468   :  { %v2354_v50 = vrot.slane %v2347_v41, %v2353_v39  ;;  %v2394_v51 = vrot.slane %v3464_v35, %v2353_v39  ;;  %v3463_v54 = vld.sshfl [vmem:[#allocation6 + $0x4] sm:$0x10 pattern:$0x75316420] }
 0x469   :  { %v2369_v53 = vcombine.high %v3463_v54, %v3463_v54 }
 0x46a   :  { %2355 = vrot.lane.b32.xlu0 %v2354_v50, %s4164_s2  ;;  %v2395_v60 = vcombine.high %v2394_v51, %v2394_v51 }
 0x46b   :  { %v2376_v55 = vrot.slane %v2369_v53, %v2353_v39 }
 0x46c   :  { %2396 = vrot.lane.b32.xlu1 %v2395_v60, %s4164_s2 }
 0x46d   :  { %2378 = vst.msk [vmem:[#allocation7 + $0x1] sm:$0x1] %vm2336_vm7, %v2376_v55 }
 0x4dc   :  { %v2356_v33 = vpop.permute.xlu0 %2355 }
 0x4dd   :  { %2359 = vst.msk [vmem:[#allocation7] sm:$0x1] %vm2358_vm8, %v2356_v33 }
 0x4de   :  { %v2397_v48 = vpop.permute.xlu1 %2396 }
 0x4df   :  { %2399 = vst.msk [vmem:[#allocation7 + $0x1] sm:$0x1] %vm2358_vm8, %v2397_v48 }
 0x4e6   :  { %v3465_v30 = vld.sshfl [vmem:[#allocation7] sm:$0x11 pattern:$0x75316420] }
 0x4e7   :  { %v2495_v6 = vcombine.high %v3465_v30, %v3465_v30  ;;  %v2502_v58 = vrot.slane %v3465_v30, %v2353_v39 }
 0x4e9   :  { %v2509_v15 = vrot.slane %v2495_v6, %v2353_v39  ;;  %v3530_v6 = vld [vmem:[%s5427_s10] ss:$0 sm:$0xff] }
 0x4eb   :  { %2864 = vmatprep.mubr.bf16.mxu1 %v2509_v15  ;;  %2905 = vmatprep.mubr.bf16.mxu0 %v2509_v15 }
 0x4ec   :  { %2865 = vmatmul.mubr.bf16.vlgmr.msra.gmra.mrb[32].mxu1 %v2502_v58  ;;  %2906 = vmatmul.mubr.bf16.vlgmr.msra.gmra.mrb[56].mxu0 %v2502_v58 }
 0x4ed   :  { %3807 = vmatpush3.bf16.msra.mxu1 %v4109_v43  ;;  %3829 = vmatpush3.bf16.msra.mxu0 %v4110_v56 }
 0x4ee   :  { %3808 = vmatprep.subr.bf16.mxu1 %v4111_v59  ;;  %3830 = vmatprep.subr.bf16.mxu0 %v4112_v0 }
 0x4f1   :  { %3809 = vmatpush3.bf16.msra.mxu1 %v4113_v42  ;;  %3831 = vmatpush3.bf16.msra.mxu0 %v4114_v1 }
 0x4f2   :  { %3810 = vmatprep.subr.bf16.mxu1 %v4115_v2  ;;  %3832 = vmatprep.subr.bf16.mxu0 %v4116_v28 }
 0x4f5   :  { %3811 = vmatpush3.bf16.msra.mxu1 %v4117_v46  ;;  %3833 = vmatpush3.bf16.msra.mxu0 %v4118_v45 }
 0x4f6   :  { %3812 = vmatprep.subr.bf16.mxu1 %v4119_v62  ;;  %3834 = vmatprep.subr.bf16.mxu0 %v4120_v44 }
 0x4f9   :  { %3813 = vmatpush3.bf16.msra.mxu1 %v4121_v3  ;;  %3835 = vmatpush3.bf16.msra.mxu0 %v4122_v9 }
 0x4fa   :  { %3814 = vmatprep.subr.bf16.mxu1 %v4123_v14  ;;  %3836 = vmatprep.subr.bf16.mxu0 %v4124_v16 }
 0x4fd   :  { %3815 = vmatpush3.bf16.msra.mxu1 %v4125_v20  ;;  %3837 = vmatpush3.bf16.msra.mxu0 %v4126_v32 }
 0x4fe   :  { %3816 = vmatprep.subr.bf16.mxu1 %v4127_v18  ;;  %3838 = vmatprep.subr.bf16.mxu0 %v4128_v19 }
 0x501   :  { %3817 = vmatpush3.bf16.msra.mxu1 %v4129_v57  ;;  %3839 = vmatpush3.bf16.msra.mxu0 %v4130_v10 }
 0x502   :  { %3818 = vmatprep.subr.bf16.mxu1 %v4131_v12  ;;  %3840 = vmatprep.subr.bf16.mxu0 %v4132_v4 }
 0x505   :  { %3819 = vmatpush3.bf16.msra.mxu1 %v4133_v22  ;;  %3841 = vmatpush3.bf16.msra.mxu0 %v4134_v38 }
 0x506   :  { %3820 = vmatprep.subr.bf16.mxu1 %v4135_v52  ;;  %3842 = vmatprep.subr.bf16.mxu0 %v4136_v24 }
 0x509   :  { %3821 = vmatpush3.bf16.msra.mxu1 %v4137_v25  ;;  %3843 = vmatpush3.bf16.msra.mxu0 %v4138_v63 }
 0x5bf   :  { %v2866_v34 = vpop.f32.mrb[32].mxu1  ;;  %v2907_v37 = vpop.f32.mrb[56].mxu0 }
 0x5c0   :  { %v2867_v39 = vadd.f32 %v2866_v34, %v2470_v27  ;;  %v2908_v40 = vadd.f32 %v2907_v37, %v2478_v29  ;;  %v2868_v11 = vpop.f32.mrb[33].mxu1  ;;  %v2909_v31 = vpop.f32.mrb[57].mxu0 }
 0x5c1   :  { %v2869_v41 = vadd.f32 %v2868_v11, %v2474_v7  ;;  %v2910_v47 = vadd.f32 %v2909_v31, %v2482_v23  ;;  %v2870_v35 = vpop.f32.mrb[34].mxu1  ;;  %v2911_v49 = vpop.f32.mrb[58].mxu0 }
 0x5c2   :  { %v2914_v50 = vmax.f32 %v2867_v39, 0.0  ;;  %v2916_v51 = vmax.f32 %v2908_v40, 0.0  ;;  %v2871_v54 = vpop.f32.mrb[35].mxu1  ;;  %v2912_v53 = vpop.f32.mrb[59].mxu0 }
 0x5c3   :  { %v2915_v60 = vmax.f32 %v2869_v41, 0.0  ;;  %v2917_v17 = vmax.f32 %v2910_v47, 0.0 }
 0x5c4   :  { %v2918_v36 = vpack.c.bf16 %v2914_v50, %v2914_v50  ;;  %v2920_v33 = vpack.c.bf16 %v2916_v51, %v2916_v51 }
 0x5c5   :  { %v2919_v55 = vpack.c.bf16 %v2915_v60, %v2915_v60  ;;  %v2921_v21 = vpack.c.bf16 %v2917_v17, %v2917_v17 }
 0x5c7   :  { %3217 = vmatprep.mubr.bf16.mxu1 %v2919_v55  ;;  %3257 = vmatprep.mubr.bf16.mxu0 %v2921_v21 }
 0x5c8   :  { %3218 = vmatmul.mubr.bf16.vlgmr.msra.gmra.mrb[36].mxu1 %v2918_v36  ;;  %3258 = vmatmul.mubr.bf16.vlgmr.msra.gmra.mrb[60].mxu0 %v2920_v33 }
 0x69b   :  { %v3822_v48 = vpop.f32.mrb[36].mxu1  ;;  %v3844_v30 = vpop.f32.mrb[60].mxu0 }
 0x69c   :  { %v3823_v15 = vpop.f32.mrb[37].mxu1  ;;  %v3845_v43 = vpop.f32.mrb[61].mxu0 }
 0x69d   :  { %v3824_v56 = vadd.f32 %v3823_v15, %v3822_v48  ;;  %v3846_v58 = vadd.f32 %v3845_v43, %v3844_v30  ;;  %v3825_v59 = vpop.f32.mrb[38].mxu1  ;;  %v3847_v0 = vpop.f32.mrb[62].mxu0 }
 0x69e   :  { %v3826_v42 = vpop.f32.mrb[39].mxu1  ;;  %v3848_v1 = vpop.f32.mrb[63].mxu0 }
 0x69f   :  { %v3220_v2 = vadd.f32 %v3824_v56, %v3530_v6 }
 0x6a1   :  { %v3260_v28 = vadd.f32 %v3846_v58, %v3220_v2 }
 0x6a3   :  { %3265 = vst [vmem:[#allocation8] sm:$0x3] %v3260_v28 }
 0x6a4   :  { %4150 = shalt.err (!%p4147_p4)
}
 0x6a5   :  { %s4151_s4 = scalar_lea.hbm %s5428_s11, 32 }
 0x6a6   :  { %p4152_p5 = scmp.ne.s32.totalorder %s5428_s11, %s4151_s4  ;;  %p4155_p6 = scmp.lt.u32.totalorder %s4151_s4, %s5428_s11 }
 0x6a8   :  { %p4157_p7 = pnand %p4155_p6, %p4152_p5 }
 0x6aa   :  { %4160 = shalt.err (!%p4157_p7)
}
 0x6ab   :  { %3275 = dma.vmem_to_hbm [thread:$0]  %s3273_s26, 32, %s5428_s11, [#allocation9]  }
 0x6ac   :  { %4161 = dma.done.wait [#allocation9], 32  }
 0x6ad   :  { %4162 = vsyncadd [#allocation9], 4294967264 }
 0x6ae   :  { %3279 = vsyncpa [#allocation9], 1 }

</bundles_post_ra>
